<compile_context>
chip_gen: v7x
topology: tpu7x:2x2x1
jax: 0.10.0
libtpu: 0.0.40
codegen_flags: <defaults>
</compile_context>

<pallas_src>
import functools

import numpy as np

import jax
import jax.numpy as jnp
from jax.experimental import pallas as pl
from jax.experimental.pallas import tpu as pltpu


# ----------------------------------------------------------------------------
# In-kernel helpers: small 0/1 selection matrices built from 2-D iotas
# (no vector integer div/mod, no reshapes, no strided slicing).
# ----------------------------------------------------------------------------
def _sel_matrices(M, R, Ho, n_batch, dtype):
    """S0, S1 of shape (M, R):  S_d[m, r] = 1  iff  r == m + (m // Ho) + d.

    They pick, for each dense output row m = n*Ho + Y, the matching row of a
    row-parity-plane matmul result (which has one extra pad row per image)."""
    rows = jax.lax.broadcasted_iota(jnp.int32, (M, R), 0)
    cols = jax.lax.broadcasted_iota(jnp.int32, (M, R), 1)
    nblk = jnp.zeros((M, R), jnp.int32)
    for j in range(1, n_batch):                       # static, tiny
        nblk = nblk + jnp.where(rows >= j * Ho, 1, 0)
    base = rows + nblk
    s0 = jnp.where(cols == base, 1.0, 0.0).astype(dtype)
    s1 = jnp.where(cols == base + 1, 1.0, 0.0).astype(dtype)
    return s0, s1


def _plane_matrices(R2, M, Ho, Hh2, n_batch, dtype):
    """PE, PO of shape (R2, M): scatter dense output rows (Y = 0..Ho-1 per image)
    into the next layer's zero-padded row-parity planes.
      even plane row i  <- output row 2i-1   (i >= 1, row 0 is the top pad)
      odd  plane row i  <- output row 2i     (i <= Hh2-1, last row is bottom pad)
    """
    r = jax.lax.broadcasted_iota(jnp.int32, (R2, M), 0)
    m = jax.lax.broadcasted_iota(jnp.int32, (R2, M), 1)
    nblk = jnp.zeros((R2, M), jnp.int32)
    for j in range(1, n_batch):
        nblk = nblk + jnp.where(r >= j * (Hh2 + 1), 1, 0)
    ii = r - nblk * (Hh2 + 1)
    pe = jnp.where((ii >= 1) & (m == nblk * Ho + 2 * ii - 1), 1.0, 0.0)
    po = jnp.where((ii <= Hh2 - 1) & (m == nblk * Ho + 2 * ii), 1.0, 0.0)
    return pe.astype(dtype), po.astype(dtype)


# ----------------------------------------------------------------------------
# Fused Pallas kernel: all 4 layers, everything resident in VMEM.
# ----------------------------------------------------------------------------
def _disc_fused_kernel(*refs, layer_dims, n_batch):
    n_layers = len(layer_dims)
    e_ref, o_ref = refs[0], refs[1]
    bw_refs = refs[2:2 + n_layers]                    # (4, W*Cin, Wo*Cout) bf16 each
    bn_flat = refs[2 + n_layers:-1]                   # (pool, gamma, beta) per BN layer
    out_ref = refs[-1]
    bn_refs = [None] + [tuple(bn_flat[3 * i:3 * i + 3]) for i in range(n_layers - 1)]

    # Row-parity planes of the (zero-row-padded, channels-last) input:
    #   E[n*(H/2+1)+i, w*Cin+ci] = x_pad[n, 2i,   w+1, ci]
    #   O[n*(H/2+1)+i, w*Cin+ci] = x_pad[n, 2i+1, w+1, ci]
    E = e_ref[...]
    O = o_ref[...]

    for l, (H, W, Cin, Cout) in enumerate(layer_dims):
        Ho, Wo = H // 2, W // 2
        R = n_batch * (Ho + 1)       # rows per parity plane (1 pad row per image)
        M = n_batch * Ho             # dense output rows
        Kout = Wo * Cout             # output lane width (== 128 at these sizes)

        bw = bw_refs[l]
        # Conv as 4 full-array matmuls: kh = 0/2 read the even plane, 1/3 the odd.
        A = (jnp.dot(E, bw[0], preferred_element_type=jnp.float32)
             + jnp.dot(O, bw[1], preferred_element_type=jnp.float32))
        B = (jnp.dot(E, bw[2], preferred_element_type=jnp.float32)
             + jnp.dot(O, bw[3], preferred_element_type=jnp.float32))
        # Drop the per-image pad row and add the kh>=2 contribution (shifted by
        # one plane row):  out[n,Y] = A[n,Y] + B[n,Y+1].
        S0, S1 = _sel_matrices(M, R, Ho, n_batch, jnp.float32)
        y = (jnp.dot(S0, A, preferred_element_type=jnp.float32)
             + jnp.dot(S1, B, preferred_element_type=jnp.float32))    # (M, Kout) f32

        if bn_refs[l] is not None:
            pool_ref, g_ref, b_ref = bn_refs[l]
            cnt = float(M * Wo)                      # = N * Ho * Wo per channel
            # Single-pass batch stats: sum and sum-of-squares, then pool the
            # Wo groups sharing a channel inside the lane dim via a 0/1 matmul.
            s1 = jnp.sum(y, axis=0, keepdims=True)                # (1, Kout)
            s2 = jnp.sum(y * y, axis=0, keepdims=True)            # (1, Kout)
            pool = pool_ref[...]                                  # (Kout, Kout)
            mean = jnp.dot(s1, pool, preferred_element_type=jnp.float32) / cnt
            msq = jnp.dot(s2, pool, preferred_element_type=jnp.float32) / cnt
            var = jnp.maximum(msq - mean * mean, 0.0)
            scale = g_ref[...] * jax.lax.rsqrt(var + 1e-5)        # gamma folded in
            shift = b_ref[...] - mean * scale
            y = y * scale + shift

        y = jnp.where(y >= 0.0, y, 0.2 * y)          # LeakyReLU(0.2)

        if l == n_layers - 1:
            out_ref[...] = y                          # (M, Kout) f32, lane-dense
        else:
            # Re-pack the activation into the next layer's row-parity planes
            # (zero borders included) with two more 0/1 matmuls; cast to bf16
            # so the next layer's taps hit the native MXU datapath.
            act = y.astype(jnp.bfloat16)
            Hh2 = Ho // 2
            R2 = n_batch * (Hh2 + 1)
            PE, PO = _plane_matrices(R2, M, Ho, Hh2, n_batch, jnp.bfloat16)
            E = jnp.dot(PE, act, preferred_element_type=jnp.float32).astype(jnp.bfloat16)
            O = jnp.dot(PO, act, preferred_element_type=jnp.float32).astype(jnp.bfloat16)


# ----------------------------------------------------------------------------
# Wrapper-side (plain JAX / numpy) preparation — all tiny, one-time per call.
# ----------------------------------------------------------------------------
def _block_toeplitz_weight(w, W_in):
    """Fold the kw taps + the stride-2 along W of Conv2d(k=4,s=2,p=1) into dense
    per-kh weight slabs:  (4, W_in*Cin, Wo*Cout)  with
      BW[kh, u*Cin+ci, X*Cout+co] = w[co,ci,kh,kw]  iff  u == 2X + kw - 1."""
    Cout, Cin, _, _ = w.shape
    Wo = W_in // 2
    u = np.arange(W_in)[:, None, None]
    X = np.arange(Wo)[None, :, None]
    kw = np.arange(4)[None, None, :]
    ind = jnp.asarray((u == 2 * X + kw - 1).astype(np.float32))   # (W_in, Wo, 4)
    bw = jnp.einsum("uxt,ocht->hucxo", ind, w.astype(jnp.float32))
    return bw.reshape(4, W_in * Cin, Wo * Cout).astype(jnp.bfloat16)


def _row_parity_planes(x_nchw):
    """NCHW input -> bf16 row-parity planes of the zero-padded, channels-last
    image, flattened to 2-D (rows = image x plane-row, lanes = W * C)."""
    N, C, H, W = x_nchw.shape
    Hh = H // 2
    K = W * C
    rows = jnp.transpose(x_nchw, (0, 2, 3, 1)).reshape(N, H, K)
    E = jnp.zeros((N, Hh + 1, K), rows.dtype).at[:, 1:, :].set(rows[:, 1::2, :])
    O = jnp.zeros((N, Hh + 1, K), rows.dtype).at[:, :Hh, :].set(rows[:, 0::2, :])
    return (E.reshape(N * (Hh + 1), K).astype(jnp.bfloat16),
            O.reshape(N * (Hh + 1), K).astype(jnp.bfloat16))


def _same_channel_pool(Wo, Cout):
    """(Wo*Cout, Wo*Cout) 0/1 matrix: 1 where both lanes hold the same channel."""
    k = np.arange(Wo * Cout)
    return jnp.asarray((k[:, None] % Cout == k[None, :] % Cout).astype(np.float32))


def _full_spec(shape):
    zeros = (0,) * len(shape)
    return pl.BlockSpec(shape, lambda i: zeros)


def discriminator_forward(x, params):
    """Forward of the InfoGAN Discriminator shared layers (4x Conv/BN/LeakyReLU)."""
    N, C, H, W = x.shape
    layer_dims = []
    h, w_sp, cin = H, W, C
    for conv_w, _, _ in params:
        cout = conv_w.shape[0]
        layer_dims.append((h, w_sp, cin, cout))
        h, w_sp, cin = h // 2, w_sp // 2, cout
    layer_dims = tuple(layer_dims)

    e0, o0 = _row_parity_planes(x)
    inputs = [e0, o0]
    for (conv_w, _, _), (_, ww, _, _) in zip(params, layer_dims):
        inputs.append(_block_toeplitz_weight(conv_w, ww))
    for li in range(1, len(params)):
        _, gamma, beta = params[li]
        _, ww, _, co = layer_dims[li]
        wo = ww // 2
        inputs.append(_same_channel_pool(wo, co))
        inputs.append(jnp.tile(gamma.reshape(1, co).astype(jnp.float32), (1, wo)))
        inputs.append(jnp.tile(beta.reshape(1, co).astype(jnp.float32), (1, wo)))

    Hl, Wl, _, Cl = layer_dims[-1]
    Ho_last, Wo_last = Hl // 2, Wl // 2
    out_sds = jax.ShapeDtypeStruct((N * Ho_last, Wo_last * Cl), jnp.float32)

    kernel = functools.partial(_disc_fused_kernel, layer_dims=layer_dims, n_batch=N)
    out2d = pl.pallas_call(
        kernel,
        out_shape=out_sds,
        grid=(1,),
        in_specs=[_full_spec(a.shape) for a in inputs],
        out_specs=_full_spec(out_sds.shape),
        compiler_params=pltpu.CompilerParams(dimension_semantics=("arbitrary",)),
    )(*inputs)

    # (N*Ho, Wo*Cout) channels-last rows -> NCHW to match the PyTorch module.
    return out2d.reshape(N, Ho_last, Wo_last, Cl).transpose(0, 3, 1, 2)


# ----------------------------------------------------------------------------
# Parameter init matching a fresh PyTorch module (DCGAN-style weights, BN in
# train() mode: gamma ~= 1, beta = 0, batch statistics).
# ----------------------------------------------------------------------------
def init_params(key, n_channel, input_dim):
    dims_in = [n_channel, input_dim, input_dim * 2, input_dim * 4]
    dims_out = [input_dim, input_dim * 2, input_dim * 4, input_dim * 8]
    params = []
    for li, (ci, co) in enumerate(zip(dims_in, dims_out)):
        key, kw, kg = jax.random.split(key, 3)
        w = 0.02 * jax.random.normal(kw, (co, ci, 4, 4), dtype=jnp.float32)
        if li == 0:
            gamma = jnp.ones((co,), jnp.float32)    # unused (no BN on layer 0)
            beta = jnp.zeros((co,), jnp.float32)
        else:
            gamma = 1.0 + 0.02 * jax.random.normal(kg, (co,), dtype=jnp.float32)
            beta = jnp.zeros((co,), jnp.float32)
        params.append((w, gamma, beta))
    return params


if __name__ == "__main__":
    # args.n_channel = 4, args.input_dim = 8, input spatial 32x32, batch 2
    N, n_channel, input_dim, H = 2, 4, 8, 32
    key = jax.random.PRNGKey(0)
    key, kx = jax.random.split(key)
    x = jax.random.normal(kx, (N, n_channel, H, H), dtype=jnp.float32)

    params = init_params(key, n_channel, input_dim)
    fwd = jax.jit(discriminator_forward)
    out = fwd(x, params)
    out = jax.block_until_ready(out)

    expected = (N, input_dim * 8, H // 16, H // 16)
    assert out.shape == expected, (out.shape, expected)
    assert jnp.all(jnp.isfinite(out))
    print("KERNEL_OK")
</pallas_src>

<mosaic_0001>
module attributes {stable_mosaic.version = 11 : i64} {
  func.func @_disc_fused_kernel(%arg0: i32, %arg1: memref<34x128xbf16, #tpu.memory_space<vmem>>, %arg2: memref<34x128xbf16, #tpu.memory_space<vmem>>, %arg3: memref<4x128x128xbf16, #tpu.memory_space<vmem>>, %arg4: memref<4x128x128xbf16, #tpu.memory_space<vmem>>, %arg5: memref<4x128x128xbf16, #tpu.memory_space<vmem>>, %arg6: memref<4x128x128xbf16, #tpu.memory_space<vmem>>, %arg7: memref<128x128xf32, #tpu.memory_space<vmem>>, %arg8: memref<1x128xf32, #tpu.memory_space<vmem>>, %arg9: memref<1x128xf32, #tpu.memory_space<vmem>>, %arg10: memref<128x128xf32, #tpu.memory_space<vmem>>, %arg11: memref<1x128xf32, #tpu.memory_space<vmem>>, %arg12: memref<1x128xf32, #tpu.memory_space<vmem>>, %arg13: memref<128x128xf32, #tpu.memory_space<vmem>>, %arg14: memref<1x128xf32, #tpu.memory_space<vmem>>, %arg15: memref<1x128xf32, #tpu.memory_space<vmem>>, %arg16: memref<4x128xf32, #tpu.memory_space<vmem>>) attributes {dimension_semantics = [#tpu.dimension_semantics<arbitrary>], iteration_bounds = array<i64: 1>, scalar_prefetch = 0 : i64, scratch_operands = 0 : i64, tpu.core_type = #tpu.core_type<tc>, window_params = [{pipeline_mode = #tpu.pipeline_mode<synchronous>, transform_indices = @transform_0, window_bounds = array<i64: 34, 128>}, {pipeline_mode = #tpu.pipeline_mode<synchronous>, transform_indices = @transform_1, window_bounds = array<i64: 34, 128>}, {pipeline_mode = #tpu.pipeline_mode<synchronous>, transform_indices = @transform_2, window_bounds = array<i64: 4, 128, 128>}, {pipeline_mode = #tpu.pipeline_mode<synchronous>, transform_indices = @transform_3, window_bounds = array<i64: 4, 128, 128>}, {pipeline_mode = #tpu.pipeline_mode<synchronous>, transform_indices = @transform_4, window_bounds = array<i64: 4, 128, 128>}, {pipeline_mode = #tpu.pipeline_mode<synchronous>, transform_indices = @transform_5, window_bounds = array<i64: 4, 128, 128>}, {pipeline_mode = #tpu.pipeline_mode<synchronous>, transform_indices = @transform_6, window_bounds = array<i64: 128, 128>}, {pipeline_mode = #tpu.pipeline_mode<synchronous>, transform_indices = @transform_7, window_bounds = array<i64: 1, 128>}, {pipeline_mode = #tpu.pipeline_mode<synchronous>, transform_indices = @transform_8, window_bounds = array<i64: 1, 128>}, {pipeline_mode = #tpu.pipeline_mode<synchronous>, transform_indices = @transform_9, window_bounds = array<i64: 128, 128>}, {pipeline_mode = #tpu.pipeline_mode<synchronous>, transform_indices = @transform_10, window_bounds = array<i64: 1, 128>}, {pipeline_mode = #tpu.pipeline_mode<synchronous>, transform_indices = @transform_11, window_bounds = array<i64: 1, 128>}, {pipeline_mode = #tpu.pipeline_mode<synchronous>, transform_indices = @transform_12, window_bounds = array<i64: 128, 128>}, {pipeline_mode = #tpu.pipeline_mode<synchronous>, transform_indices = @transform_13, window_bounds = array<i64: 1, 128>}, {pipeline_mode = #tpu.pipeline_mode<synchronous>, transform_indices = @transform_14, window_bounds = array<i64: 1, 128>}, {pipeline_mode = #tpu.pipeline_mode<synchronous>, transform_indices = @transform_15, window_bounds = array<i64: 4, 128>}]} {
    %c0 = arith.constant 0 : index
    %c0_0 = arith.constant 0 : index
    %0 = vector.load %arg1[%c0, %c0_0] : memref<34x128xbf16, #tpu.memory_space<vmem>>, vector<34x128xbf16>
    %c0_1 = arith.constant 0 : index
    %c0_2 = arith.constant 0 : index
    %1 = vector.load %arg2[%c0_1, %c0_2] : memref<34x128xbf16, #tpu.memory_space<vmem>>, vector<34x128xbf16>
    %c0_3 = arith.constant 0 : index
    %c0_4 = arith.constant 0 : index
    %c0_5 = arith.constant 0 : index
    %2 = vector.load %arg3[%c0_3, %c0_4, %c0_5] : memref<4x128x128xbf16, #tpu.memory_space<vmem>>, vector<1x128x128xbf16>
    %3 = vector.shape_cast %2 : vector<1x128x128xbf16> to vector<128x128xbf16>
    %cst = arith.constant dense<0.000000e+00> : vector<34x128xf32>
    %4 = tpu.matmul %0, %3, %cst {dimension_numbers = #tpu.dot_dimension_numbers<[1], [0], [0], [1], [0, 0, 1, 1], [], []>} : vector<34x128xbf16>, vector<128x128xbf16>, vector<34x128xf32> -> vector<34x128xf32>
    %c1 = arith.constant 1 : index
    %c0_6 = arith.constant 0 : index
    %c0_7 = arith.constant 0 : index
    %5 = vector.load %arg3[%c1, %c0_6, %c0_7] : memref<4x128x128xbf16, #tpu.memory_space<vmem>>, vector<1x128x128xbf16>
    %6 = vector.shape_cast %5 : vector<1x128x128xbf16> to vector<128x128xbf16>
    %cst_8 = arith.constant dense<0.000000e+00> : vector<34x128xf32>
    %7 = tpu.matmul %1, %6, %cst_8 {dimension_numbers = #tpu.dot_dimension_numbers<[1], [0], [0], [1], [0, 0, 1, 1], [], []>} : vector<34x128xbf16>, vector<128x128xbf16>, vector<34x128xf32> -> vector<34x128xf32>
    %8 = arith.addf %4, %7 : vector<34x128xf32>
    %c2 = arith.constant 2 : index
    %c0_9 = arith.constant 0 : index
    %c0_10 = arith.constant 0 : index
    %9 = vector.load %arg3[%c2, %c0_9, %c0_10] : memref<4x128x128xbf16, #tpu.memory_space<vmem>>, vector<1x128x128xbf16>
    %10 = vector.shape_cast %9 : vector<1x128x128xbf16> to vector<128x128xbf16>
    %cst_11 = arith.constant dense<0.000000e+00> : vector<34x128xf32>
    %11 = tpu.matmul %0, %10, %cst_11 {dimension_numbers = #tpu.dot_dimension_numbers<[1], [0], [0], [1], [0, 0, 1, 1], [], []>} : vector<34x128xbf16>, vector<128x128xbf16>, vector<34x128xf32> -> vector<34x128xf32>
    %c3 = arith.constant 3 : index
    %c0_12 = arith.constant 0 : index
    %c0_13 = arith.constant 0 : index
    %12 = vector.load %arg3[%c3, %c0_12, %c0_13] : memref<4x128x128xbf16, #tpu.memory_space<vmem>>, vector<1x128x128xbf16>
    %13 = vector.shape_cast %12 : vector<1x128x128xbf16> to vector<128x128xbf16>
    %cst_14 = arith.constant dense<0.000000e+00> : vector<34x128xf32>
    %14 = tpu.matmul %1, %13, %cst_14 {dimension_numbers = #tpu.dot_dimension_numbers<[1], [0], [0], [1], [0, 0, 1, 1], [], []>} : vector<34x128xbf16>, vector<128x128xbf16>, vector<34x128xf32> -> vector<34x128xf32>
    %15 = arith.addf %11, %14 : vector<34x128xf32>
    %16 = tpu.iota {dimensions = array<i32: 0>} : vector<32x34xi32>
    %17 = tpu.iota {dimensions = array<i32: 1>} : vector<32x34xi32>
    %c0_i32 = arith.constant 0 : i32
    %18 = vector.broadcast %c0_i32 : i32 to vector<32x34xi32>
    %c16_i32 = arith.constant 16 : i32
    %19 = vector.broadcast %c16_i32 : i32 to vector<32x34xi32>
    %20 = arith.cmpi sge, %16, %19 : vector<32x34xi32>
    %c1_i32 = arith.constant 1 : i32
    %c0_i32_15 = arith.constant 0 : i32
    %21 = vector.broadcast %c1_i32 : i32 to vector<32x34xi32>
    %22 = vector.broadcast %c0_i32_15 : i32 to vector<32x34xi32>
    %23 = arith.select %20, %21, %22 : vector<32x34xi1>, vector<32x34xi32>
    %24 = arith.addi %18, %23 : vector<32x34xi32>
    %25 = arith.addi %16, %24 : vector<32x34xi32>
    %26 = arith.cmpi eq, %17, %25 : vector<32x34xi32>
    %cst_16 = arith.constant 1.000000e+00 : f32
    %cst_17 = arith.constant 0.000000e+00 : f32
    %27 = vector.broadcast %cst_16 : f32 to vector<32x34xf32>
    %28 = vector.broadcast %cst_17 : f32 to vector<32x34xf32>
    %29 = arith.select %26, %27, %28 : vector<32x34xi1>, vector<32x34xf32>
    %c1_i32_18 = arith.constant 1 : i32
    %30 = vector.broadcast %c1_i32_18 : i32 to vector<32x34xi32>
    %31 = arith.addi %25, %30 : vector<32x34xi32>
    %32 = arith.cmpi eq, %17, %31 : vector<32x34xi32>
    %cst_19 = arith.constant 1.000000e+00 : f32
    %cst_20 = arith.constant 0.000000e+00 : f32
    %33 = vector.broadcast %cst_19 : f32 to vector<32x34xf32>
    %34 = vector.broadcast %cst_20 : f32 to vector<32x34xf32>
    %35 = arith.select %32, %33, %34 : vector<32x34xi1>, vector<32x34xf32>
    %cst_21 = arith.constant dense<0.000000e+00> : vector<32x128xf32>
    %36 = tpu.matmul %29, %8, %cst_21 {dimension_numbers = #tpu.dot_dimension_numbers<[1], [0], [0], [1], [0, 0, 1, 1], [], []>} : vector<32x34xf32>, vector<34x128xf32>, vector<32x128xf32> -> vector<32x128xf32>
    %cst_22 = arith.constant dense<0.000000e+00> : vector<32x128xf32>
    %37 = tpu.matmul %35, %15, %cst_22 {dimension_numbers = #tpu.dot_dimension_numbers<[1], [0], [0], [1], [0, 0, 1, 1], [], []>} : vector<32x34xf32>, vector<34x128xf32>, vector<32x128xf32> -> vector<32x128xf32>
    %38 = arith.addf %36, %37 : vector<32x128xf32>
    %cst_23 = arith.constant 0.000000e+00 : f32
    %39 = vector.broadcast %cst_23 : f32 to vector<32x128xf32>
    %40 = arith.cmpf oge, %38, %39 : vector<32x128xf32>
    %cst_24 = arith.constant 2.000000e-01 : f32
    %41 = vector.broadcast %cst_24 : f32 to vector<32x128xf32>
    %42 = arith.mulf %41, %38 : vector<32x128xf32>
    %43 = arith.select %40, %38, %42 : vector<32x128xi1>, vector<32x128xf32>
    %44 = arith.truncf %43 : vector<32x128xf32> to vector<32x128xbf16>
    %45 = tpu.iota {dimensions = array<i32: 0>} : vector<18x32xi32>
    %46 = tpu.iota {dimensions = array<i32: 1>} : vector<18x32xi32>
    %c0_i32_25 = arith.constant 0 : i32
    %47 = vector.broadcast %c0_i32_25 : i32 to vector<18x32xi32>
    %c9_i32 = arith.constant 9 : i32
    %48 = vector.broadcast %c9_i32 : i32 to vector<18x32xi32>
    %49 = arith.cmpi sge, %45, %48 : vector<18x32xi32>
    %c1_i32_26 = arith.constant 1 : i32
    %c0_i32_27 = arith.constant 0 : i32
    %50 = vector.broadcast %c1_i32_26 : i32 to vector<18x32xi32>
    %51 = vector.broadcast %c0_i32_27 : i32 to vector<18x32xi32>
    %52 = arith.select %49, %50, %51 : vector<18x32xi1>, vector<18x32xi32>
    %53 = arith.addi %47, %52 : vector<18x32xi32>
    %c9_i32_28 = arith.constant 9 : i32
    %54 = vector.broadcast %c9_i32_28 : i32 to vector<18x32xi32>
    %55 = arith.muli %53, %54 : vector<18x32xi32>
    %56 = arith.subi %45, %55 : vector<18x32xi32>
    %c1_i32_29 = arith.constant 1 : i32
    %57 = vector.broadcast %c1_i32_29 : i32 to vector<18x32xi32>
    %58 = arith.cmpi sge, %56, %57 : vector<18x32xi32>
    %c16_i32_30 = arith.constant 16 : i32
    %59 = vector.broadcast %c16_i32_30 : i32 to vector<18x32xi32>
    %60 = arith.muli %53, %59 : vector<18x32xi32>
    %c2_i32 = arith.constant 2 : i32
    %61 = vector.broadcast %c2_i32 : i32 to vector<18x32xi32>
    %62 = arith.muli %61, %56 : vector<18x32xi32>
    %63 = arith.addi %60, %62 : vector<18x32xi32>
    %c1_i32_31 = arith.constant 1 : i32
    %64 = vector.broadcast %c1_i32_31 : i32 to vector<18x32xi32>
    %65 = arith.subi %63, %64 : vector<18x32xi32>
    %66 = arith.cmpi eq, %46, %65 : vector<18x32xi32>
    %67 = arith.andi %58, %66 : vector<18x32xi1>
    %cst_32 = arith.constant 1.000000e+00 : f32
    %cst_33 = arith.constant 0.000000e+00 : f32
    %68 = vector.broadcast %cst_32 : f32 to vector<18x32xf32>
    %69 = vector.broadcast %cst_33 : f32 to vector<18x32xf32>
    %70 = arith.select %67, %68, %69 : vector<18x32xi1>, vector<18x32xf32>
    %c7_i32 = arith.constant 7 : i32
    %71 = vector.broadcast %c7_i32 : i32 to vector<18x32xi32>
    %72 = arith.cmpi sle, %56, %71 : vector<18x32xi32>
    %c16_i32_34 = arith.constant 16 : i32
    %73 = vector.broadcast %c16_i32_34 : i32 to vector<18x32xi32>
    %74 = arith.muli %53, %73 : vector<18x32xi32>
    %c2_i32_35 = arith.constant 2 : i32
    %75 = vector.broadcast %c2_i32_35 : i32 to vector<18x32xi32>
    %76 = arith.muli %75, %56 : vector<18x32xi32>
    %77 = arith.addi %74, %76 : vector<18x32xi32>
    %78 = arith.cmpi eq, %46, %77 : vector<18x32xi32>
    %79 = arith.andi %72, %78 : vector<18x32xi1>
    %cst_36 = arith.constant 1.000000e+00 : f32
    %cst_37 = arith.constant 0.000000e+00 : f32
    %80 = vector.broadcast %cst_36 : f32 to vector<18x32xf32>
    %81 = vector.broadcast %cst_37 : f32 to vector<18x32xf32>
    %82 = arith.select %79, %80, %81 : vector<18x32xi1>, vector<18x32xf32>
    %83 = arith.truncf %70 : vector<18x32xf32> to vector<18x32xbf16>
    %84 = arith.truncf %82 : vector<18x32xf32> to vector<18x32xbf16>
    %cst_38 = arith.constant dense<0.000000e+00> : vector<18x128xf32>
    %85 = tpu.matmul %83, %44, %cst_38 {dimension_numbers = #tpu.dot_dimension_numbers<[1], [0], [0], [1], [0, 0, 1, 1], [], []>} : vector<18x32xbf16>, vector<32x128xbf16>, vector<18x128xf32> -> vector<18x128xf32>
    %86 = arith.truncf %85 : vector<18x128xf32> to vector<18x128xbf16>
    %cst_39 = arith.constant dense<0.000000e+00> : vector<18x128xf32>
    %87 = tpu.matmul %84, %44, %cst_39 {dimension_numbers = #tpu.dot_dimension_numbers<[1], [0], [0], [1], [0, 0, 1, 1], [], []>} : vector<18x32xbf16>, vector<32x128xbf16>, vector<18x128xf32> -> vector<18x128xf32>
    %88 = arith.truncf %87 : vector<18x128xf32> to vector<18x128xbf16>
    %c0_40 = arith.constant 0 : index
    %c0_41 = arith.constant 0 : index
    %c0_42 = arith.constant 0 : index
    %89 = vector.load %arg4[%c0_40, %c0_41, %c0_42] : memref<4x128x128xbf16, #tpu.memory_space<vmem>>, vector<1x128x128xbf16>
    %90 = vector.shape_cast %89 : vector<1x128x128xbf16> to vector<128x128xbf16>
    %cst_43 = arith.constant dense<0.000000e+00> : vector<18x128xf32>
    %91 = tpu.matmul %86, %90, %cst_43 {dimension_numbers = #tpu.dot_dimension_numbers<[1], [0], [0], [1], [0, 0, 1, 1], [], []>} : vector<18x128xbf16>, vector<128x128xbf16>, vector<18x128xf32> -> vector<18x128xf32>
    %c1_44 = arith.constant 1 : index
    %c0_45 = arith.constant 0 : index
    %c0_46 = arith.constant 0 : index
    %92 = vector.load %arg4[%c1_44, %c0_45, %c0_46] : memref<4x128x128xbf16, #tpu.memory_space<vmem>>, vector<1x128x128xbf16>
    %93 = vector.shape_cast %92 : vector<1x128x128xbf16> to vector<128x128xbf16>
    %cst_47 = arith.constant dense<0.000000e+00> : vector<18x128xf32>
    %94 = tpu.matmul %88, %93, %cst_47 {dimension_numbers = #tpu.dot_dimension_numbers<[1], [0], [0], [1], [0, 0, 1, 1], [], []>} : vector<18x128xbf16>, vector<128x128xbf16>, vector<18x128xf32> -> vector<18x128xf32>
    %95 = arith.addf %91, %94 : vector<18x128xf32>
    %c2_48 = arith.constant 2 : index
    %c0_49 = arith.constant 0 : index
    %c0_50 = arith.constant 0 : index
    %96 = vector.load %arg4[%c2_48, %c0_49, %c0_50] : memref<4x128x128xbf16, #tpu.memory_space<vmem>>, vector<1x128x128xbf16>
    %97 = vector.shape_cast %96 : vector<1x128x128xbf16> to vector<128x128xbf16>
    %cst_51 = arith.constant dense<0.000000e+00> : vector<18x128xf32>
    %98 = tpu.matmul %86, %97, %cst_51 {dimension_numbers = #tpu.dot_dimension_numbers<[1], [0], [0], [1], [0, 0, 1, 1], [], []>} : vector<18x128xbf16>, vector<128x128xbf16>, vector<18x128xf32> -> vector<18x128xf32>
    %c3_52 = arith.constant 3 : index
    %c0_53 = arith.constant 0 : index
    %c0_54 = arith.constant 0 : index
    %99 = vector.load %arg4[%c3_52, %c0_53, %c0_54] : memref<4x128x128xbf16, #tpu.memory_space<vmem>>, vector<1x128x128xbf16>
    %100 = vector.shape_cast %99 : vector<1x128x128xbf16> to vector<128x128xbf16>
    %cst_55 = arith.constant dense<0.000000e+00> : vector<18x128xf32>
    %101 = tpu.matmul %88, %100, %cst_55 {dimension_numbers = #tpu.dot_dimension_numbers<[1], [0], [0], [1], [0, 0, 1, 1], [], []>} : vector<18x128xbf16>, vector<128x128xbf16>, vector<18x128xf32> -> vector<18x128xf32>
    %102 = arith.addf %98, %101 : vector<18x128xf32>
    %103 = tpu.iota {dimensions = array<i32: 0>} : vector<16x18xi32>
    %104 = tpu.iota {dimensions = array<i32: 1>} : vector<16x18xi32>
    %c0_i32_56 = arith.constant 0 : i32
    %105 = vector.broadcast %c0_i32_56 : i32 to vector<16x18xi32>
    %c8_i32 = arith.constant 8 : i32
    %106 = vector.broadcast %c8_i32 : i32 to vector<16x18xi32>
    %107 = arith.cmpi sge, %103, %106 : vector<16x18xi32>
    %c1_i32_57 = arith.constant 1 : i32
    %c0_i32_58 = arith.constant 0 : i32
    %108 = vector.broadcast %c1_i32_57 : i32 to vector<16x18xi32>
    %109 = vector.broadcast %c0_i32_58 : i32 to vector<16x18xi32>
    %110 = arith.select %107, %108, %109 : vector<16x18xi1>, vector<16x18xi32>
    %111 = arith.addi %105, %110 : vector<16x18xi32>
    %112 = arith.addi %103, %111 : vector<16x18xi32>
    %113 = arith.cmpi eq, %104, %112 : vector<16x18xi32>
    %cst_59 = arith.constant 1.000000e+00 : f32
    %cst_60 = arith.constant 0.000000e+00 : f32
    %114 = vector.broadcast %cst_59 : f32 to vector<16x18xf32>
    %115 = vector.broadcast %cst_60 : f32 to vector<16x18xf32>
    %116 = arith.select %113, %114, %115 : vector<16x18xi1>, vector<16x18xf32>
    %c1_i32_61 = arith.constant 1 : i32
    %117 = vector.broadcast %c1_i32_61 : i32 to vector<16x18xi32>
    %118 = arith.addi %112, %117 : vector<16x18xi32>
    %119 = arith.cmpi eq, %104, %118 : vector<16x18xi32>
    %cst_62 = arith.constant 1.000000e+00 : f32
    %cst_63 = arith.constant 0.000000e+00 : f32
    %120 = vector.broadcast %cst_62 : f32 to vector<16x18xf32>
    %121 = vector.broadcast %cst_63 : f32 to vector<16x18xf32>
    %122 = arith.select %119, %120, %121 : vector<16x18xi1>, vector<16x18xf32>
    %cst_64 = arith.constant dense<0.000000e+00> : vector<16x128xf32>
    %123 = tpu.matmul %116, %95, %cst_64 {dimension_numbers = #tpu.dot_dimension_numbers<[1], [0], [0], [1], [0, 0, 1, 1], [], []>} : vector<16x18xf32>, vector<18x128xf32>, vector<16x128xf32> -> vector<16x128xf32>
    %cst_65 = arith.constant dense<0.000000e+00> : vector<16x128xf32>
    %124 = tpu.matmul %122, %102, %cst_65 {dimension_numbers = #tpu.dot_dimension_numbers<[1], [0], [0], [1], [0, 0, 1, 1], [], []>} : vector<16x18xf32>, vector<18x128xf32>, vector<16x128xf32> -> vector<16x128xf32>
    %125 = arith.addf %123, %124 : vector<16x128xf32>
    %cst_66 = arith.constant dense<0.000000e+00> : vector<128xf32>
    %126 = vector.multi_reduction <add>, %125, %cst_66 [0] : vector<16x128xf32> to vector<128xf32>
    %127 = vector.shape_cast %126 : vector<128xf32> to vector<1x128xf32>
    %128 = arith.mulf %125, %125 : vector<16x128xf32>
    %cst_67 = arith.constant dense<0.000000e+00> : vector<128xf32>
    %129 = vector.multi_reduction <add>, %128, %cst_67 [0] : vector<16x128xf32> to vector<128xf32>
    %130 = vector.shape_cast %129 : vector<128xf32> to vector<1x128xf32>
    %c0_68 = arith.constant 0 : index
    %c0_69 = arith.constant 0 : index
    %131 = vector.load %arg7[%c0_68, %c0_69] : memref<128x128xf32, #tpu.memory_space<vmem>>, vector<128x128xf32>
    %cst_70 = arith.constant dense<0.000000e+00> : vector<1x128xf32>
    %132 = tpu.matmul %127, %131, %cst_70 {dimension_numbers = #tpu.dot_dimension_numbers<[1], [0], [0], [1], [0, 0, 1, 1], [], []>} : vector<1x128xf32>, vector<128x128xf32>, vector<1x128xf32> -> vector<1x128xf32>
    %cst_71 = arith.constant 1.280000e+02 : f32
    %133 = vector.broadcast %cst_71 : f32 to vector<1x128xf32>
    %134 = arith.divf %132, %133 : vector<1x128xf32>
    %cst_72 = arith.constant dense<0.000000e+00> : vector<1x128xf32>
    %135 = tpu.matmul %130, %131, %cst_72 {dimension_numbers = #tpu.dot_dimension_numbers<[1], [0], [0], [1], [0, 0, 1, 1], [], []>} : vector<1x128xf32>, vector<128x128xf32>, vector<1x128xf32> -> vector<1x128xf32>
    %cst_73 = arith.constant 1.280000e+02 : f32
    %136 = vector.broadcast %cst_73 : f32 to vector<1x128xf32>
    %137 = arith.divf %135, %136 : vector<1x128xf32>
    %138 = arith.mulf %134, %134 : vector<1x128xf32>
    %139 = arith.subf %137, %138 : vector<1x128xf32>
    %cst_74 = arith.constant 0.000000e+00 : f32
    %140 = vector.broadcast %cst_74 : f32 to vector<1x128xf32>
    %141 = arith.maximumf %139, %140 : vector<1x128xf32>
    %c0_75 = arith.constant 0 : index
    %c0_76 = arith.constant 0 : index
    %142 = vector.load %arg8[%c0_75, %c0_76] : memref<1x128xf32, #tpu.memory_space<vmem>>, vector<1x128xf32>
    %cst_77 = arith.constant 9.99999974E-6 : f32
    %143 = vector.broadcast %cst_77 : f32 to vector<1x128xf32>
    %144 = arith.addf %141, %143 : vector<1x128xf32>
    %145 = math.rsqrt %144 : vector<1x128xf32>
    %146 = arith.mulf %142, %145 : vector<1x128xf32>
    %c0_78 = arith.constant 0 : index
    %c0_79 = arith.constant 0 : index
    %147 = vector.load %arg9[%c0_78, %c0_79] : memref<1x128xf32, #tpu.memory_space<vmem>>, vector<1x128xf32>
    %148 = arith.mulf %134, %146 : vector<1x128xf32>
    %149 = arith.subf %147, %148 : vector<1x128xf32>
    %150 = vector.broadcast %146 : vector<1x128xf32> to vector<16x128xf32>
    %151 = arith.mulf %125, %150 : vector<16x128xf32>
    %152 = vector.broadcast %149 : vector<1x128xf32> to vector<16x128xf32>
    %153 = arith.addf %151, %152 : vector<16x128xf32>
    %cst_80 = arith.constant 0.000000e+00 : f32
    %154 = vector.broadcast %cst_80 : f32 to vector<16x128xf32>
    %155 = arith.cmpf oge, %153, %154 : vector<16x128xf32>
    %cst_81 = arith.constant 2.000000e-01 : f32
    %156 = vector.broadcast %cst_81 : f32 to vector<16x128xf32>
    %157 = arith.mulf %156, %153 : vector<16x128xf32>
    %158 = arith.select %155, %153, %157 : vector<16x128xi1>, vector<16x128xf32>
    %159 = arith.truncf %158 : vector<16x128xf32> to vector<16x128xbf16>
    %160 = tpu.iota {dimensions = array<i32: 0>} : vector<10x16xi32>
    %161 = tpu.iota {dimensions = array<i32: 1>} : vector<10x16xi32>
    %c0_i32_82 = arith.constant 0 : i32
    %162 = vector.broadcast %c0_i32_82 : i32 to vector<10x16xi32>
    %c5_i32 = arith.constant 5 : i32
    %163 = vector.broadcast %c5_i32 : i32 to vector<10x16xi32>
    %164 = arith.cmpi sge, %160, %163 : vector<10x16xi32>
    %c1_i32_83 = arith.constant 1 : i32
    %c0_i32_84 = arith.constant 0 : i32
    %165 = vector.broadcast %c1_i32_83 : i32 to vector<10x16xi32>
    %166 = vector.broadcast %c0_i32_84 : i32 to vector<10x16xi32>
    %167 = arith.select %164, %165, %166 : vector<10x16xi1>, vector<10x16xi32>
    %168 = arith.addi %162, %167 : vector<10x16xi32>
    %c5_i32_85 = arith.constant 5 : i32
    %169 = vector.broadcast %c5_i32_85 : i32 to vector<10x16xi32>
    %170 = arith.muli %168, %169 : vector<10x16xi32>
    %171 = arith.subi %160, %170 : vector<10x16xi32>
    %c1_i32_86 = arith.constant 1 : i32
    %172 = vector.broadcast %c1_i32_86 : i32 to vector<10x16xi32>
    %173 = arith.cmpi sge, %171, %172 : vector<10x16xi32>
    %c8_i32_87 = arith.constant 8 : i32
    %174 = vector.broadcast %c8_i32_87 : i32 to vector<10x16xi32>
    %175 = arith.muli %168, %174 : vector<10x16xi32>
    %c2_i32_88 = arith.constant 2 : i32
    %176 = vector.broadcast %c2_i32_88 : i32 to vector<10x16xi32>
    %177 = arith.muli %176, %171 : vector<10x16xi32>
    %178 = arith.addi %175, %177 : vector<10x16xi32>
    %c1_i32_89 = arith.constant 1 : i32
    %179 = vector.broadcast %c1_i32_89 : i32 to vector<10x16xi32>
    %180 = arith.subi %178, %179 : vector<10x16xi32>
    %181 = arith.cmpi eq, %161, %180 : vector<10x16xi32>
    %182 = arith.andi %173, %181 : vector<10x16xi1>
    %cst_90 = arith.constant 1.000000e+00 : f32
    %cst_91 = arith.constant 0.000000e+00 : f32
    %183 = vector.broadcast %cst_90 : f32 to vector<10x16xf32>
    %184 = vector.broadcast %cst_91 : f32 to vector<10x16xf32>
    %185 = arith.select %182, %183, %184 : vector<10x16xi1>, vector<10x16xf32>
    %c3_i32 = arith.constant 3 : i32
    %186 = vector.broadcast %c3_i32 : i32 to vector<10x16xi32>
    %187 = arith.cmpi sle, %171, %186 : vector<10x16xi32>
    %c8_i32_92 = arith.constant 8 : i32
    %188 = vector.broadcast %c8_i32_92 : i32 to vector<10x16xi32>
    %189 = arith.muli %168, %188 : vector<10x16xi32>
    %c2_i32_93 = arith.constant 2 : i32
    %190 = vector.broadcast %c2_i32_93 : i32 to vector<10x16xi32>
    %191 = arith.muli %190, %171 : vector<10x16xi32>
    %192 = arith.addi %189, %191 : vector<10x16xi32>
    %193 = arith.cmpi eq, %161, %192 : vector<10x16xi32>
    %194 = arith.andi %187, %193 : vector<10x16xi1>
    %cst_94 = arith.constant 1.000000e+00 : f32
    %cst_95 = arith.constant 0.000000e+00 : f32
    %195 = vector.broadcast %cst_94 : f32 to vector<10x16xf32>
    %196 = vector.broadcast %cst_95 : f32 to vector<10x16xf32>
    %197 = arith.select %194, %195, %196 : vector<10x16xi1>, vector<10x16xf32>
    %198 = arith.truncf %185 : vector<10x16xf32> to vector<10x16xbf16>
    %199 = arith.truncf %197 : vector<10x16xf32> to vector<10x16xbf16>
    %cst_96 = arith.constant dense<0.000000e+00> : vector<10x128xf32>
    %200 = tpu.matmul %198, %159, %cst_96 {dimension_numbers = #tpu.dot_dimension_numbers<[1], [0], [0], [1], [0, 0, 1, 1], [], []>} : vector<10x16xbf16>, vector<16x128xbf16>, vector<10x128xf32> -> vector<10x128xf32>
    %201 = arith.truncf %200 : vector<10x128xf32> to vector<10x128xbf16>
    %cst_97 = arith.constant dense<0.000000e+00> : vector<10x128xf32>
    %202 = tpu.matmul %199, %159, %cst_97 {dimension_numbers = #tpu.dot_dimension_numbers<[1], [0], [0], [1], [0, 0, 1, 1], [], []>} : vector<10x16xbf16>, vector<16x128xbf16>, vector<10x128xf32> -> vector<10x128xf32>
    %203 = arith.truncf %202 : vector<10x128xf32> to vector<10x128xbf16>
    %c0_98 = arith.constant 0 : index
    %c0_99 = arith.constant 0 : index
    %c0_100 = arith.constant 0 : index
    %204 = vector.load %arg5[%c0_98, %c0_99, %c0_100] : memref<4x128x128xbf16, #tpu.memory_space<vmem>>, vector<1x128x128xbf16>
    %205 = vector.shape_cast %204 : vector<1x128x128xbf16> to vector<128x128xbf16>
    %cst_101 = arith.constant dense<0.000000e+00> : vector<10x128xf32>
    %206 = tpu.matmul %201, %205, %cst_101 {dimension_numbers = #tpu.dot_dimension_numbers<[1], [0], [0], [1], [0, 0, 1, 1], [], []>} : vector<10x128xbf16>, vector<128x128xbf16>, vector<10x128xf32> -> vector<10x128xf32>
    %c1_102 = arith.constant 1 : index
    %c0_103 = arith.constant 0 : index
    %c0_104 = arith.constant 0 : index
    %207 = vector.load %arg5[%c1_102, %c0_103, %c0_104] : memref<4x128x128xbf16, #tpu.memory_space<vmem>>, vector<1x128x128xbf16>
    %208 = vector.shape_cast %207 : vector<1x128x128xbf16> to vector<128x128xbf16>
    %cst_105 = arith.constant dense<0.000000e+00> : vector<10x128xf32>
    %209 = tpu.matmul %203, %208, %cst_105 {dimension_numbers = #tpu.dot_dimension_numbers<[1], [0], [0], [1], [0, 0, 1, 1], [], []>} : vector<10x128xbf16>, vector<128x128xbf16>, vector<10x128xf32> -> vector<10x128xf32>
    %210 = arith.addf %206, %209 : vector<10x128xf32>
    %c2_106 = arith.constant 2 : index
    %c0_107 = arith.constant 0 : index
    %c0_108 = arith.constant 0 : index
    %211 = vector.load %arg5[%c2_106, %c0_107, %c0_108] : memref<4x128x128xbf16, #tpu.memory_space<vmem>>, vector<1x128x128xbf16>
    %212 = vector.shape_cast %211 : vector<1x128x128xbf16> to vector<128x128xbf16>
    %cst_109 = arith.constant dense<0.000000e+00> : vector<10x128xf32>
    %213 = tpu.matmul %201, %212, %cst_109 {dimension_numbers = #tpu.dot_dimension_numbers<[1], [0], [0], [1], [0, 0, 1, 1], [], []>} : vector<10x128xbf16>, vector<128x128xbf16>, vector<10x128xf32> -> vector<10x128xf32>
    %c3_110 = arith.constant 3 : index
    %c0_111 = arith.constant 0 : index
    %c0_112 = arith.constant 0 : index
    %214 = vector.load %arg5[%c3_110, %c0_111, %c0_112] : memref<4x128x128xbf16, #tpu.memory_space<vmem>>, vector<1x128x128xbf16>
    %215 = vector.shape_cast %214 : vector<1x128x128xbf16> to vector<128x128xbf16>
    %cst_113 = arith.constant dense<0.000000e+00> : vector<10x128xf32>
    %216 = tpu.matmul %203, %215, %cst_113 {dimension_numbers = #tpu.dot_dimension_numbers<[1], [0], [0], [1], [0, 0, 1, 1], [], []>} : vector<10x128xbf16>, vector<128x128xbf16>, vector<10x128xf32> -> vector<10x128xf32>
    %217 = arith.addf %213, %216 : vector<10x128xf32>
    %218 = tpu.iota {dimensions = array<i32: 0>} : vector<8x10xi32>
    %219 = tpu.iota {dimensions = array<i32: 1>} : vector<8x10xi32>
    %c0_i32_114 = arith.constant 0 : i32
    %220 = vector.broadcast %c0_i32_114 : i32 to vector<8x10xi32>
    %c4_i32 = arith.constant 4 : i32
    %221 = vector.broadcast %c4_i32 : i32 to vector<8x10xi32>
    %222 = arith.cmpi sge, %218, %221 : vector<8x10xi32>
    %c1_i32_115 = arith.constant 1 : i32
    %c0_i32_116 = arith.constant 0 : i32
    %223 = vector.broadcast %c1_i32_115 : i32 to vector<8x10xi32>
    %224 = vector.broadcast %c0_i32_116 : i32 to vector<8x10xi32>
    %225 = arith.select %222, %223, %224 : vector<8x10xi1>, vector<8x10xi32>
    %226 = arith.addi %220, %225 : vector<8x10xi32>
    %227 = arith.addi %218, %226 : vector<8x10xi32>
    %228 = arith.cmpi eq, %219, %227 : vector<8x10xi32>
    %cst_117 = arith.constant 1.000000e+00 : f32
    %cst_118 = arith.constant 0.000000e+00 : f32
    %229 = vector.broadcast %cst_117 : f32 to vector<8x10xf32>
    %230 = vector.broadcast %cst_118 : f32 to vector<8x10xf32>
    %231 = arith.select %228, %229, %230 : vector<8x10xi1>, vector<8x10xf32>
    %c1_i32_119 = arith.constant 1 : i32
    %232 = vector.broadcast %c1_i32_119 : i32 to vector<8x10xi32>
    %233 = arith.addi %227, %232 : vector<8x10xi32>
    %234 = arith.cmpi eq, %219, %233 : vector<8x10xi32>
    %cst_120 = arith.constant 1.000000e+00 : f32
    %cst_121 = arith.constant 0.000000e+00 : f32
    %235 = vector.broadcast %cst_120 : f32 to vector<8x10xf32>
    %236 = vector.broadcast %cst_121 : f32 to vector<8x10xf32>
    %237 = arith.select %234, %235, %236 : vector<8x10xi1>, vector<8x10xf32>
    %cst_122 = arith.constant dense<0.000000e+00> : vector<8x128xf32>
    %238 = tpu.matmul %231, %210, %cst_122 {dimension_numbers = #tpu.dot_dimension_numbers<[1], [0], [0], [1], [0, 0, 1, 1], [], []>} : vector<8x10xf32>, vector<10x128xf32>, vector<8x128xf32> -> vector<8x128xf32>
    %cst_123 = arith.constant dense<0.000000e+00> : vector<8x128xf32>
    %239 = tpu.matmul %237, %217, %cst_123 {dimension_numbers = #tpu.dot_dimension_numbers<[1], [0], [0], [1], [0, 0, 1, 1], [], []>} : vector<8x10xf32>, vector<10x128xf32>, vector<8x128xf32> -> vector<8x128xf32>
    %240 = arith.addf %238, %239 : vector<8x128xf32>
    %cst_124 = arith.constant dense<0.000000e+00> : vector<128xf32>
    %241 = vector.multi_reduction <add>, %240, %cst_124 [0] : vector<8x128xf32> to vector<128xf32>
    %242 = vector.shape_cast %241 : vector<128xf32> to vector<1x128xf32>
    %243 = arith.mulf %240, %240 : vector<8x128xf32>
    %cst_125 = arith.constant dense<0.000000e+00> : vector<128xf32>
    %244 = vector.multi_reduction <add>, %243, %cst_125 [0] : vector<8x128xf32> to vector<128xf32>
    %245 = vector.shape_cast %244 : vector<128xf32> to vector<1x128xf32>
    %c0_126 = arith.constant 0 : index
    %c0_127 = arith.constant 0 : index
    %246 = vector.load %arg10[%c0_126, %c0_127] : memref<128x128xf32, #tpu.memory_space<vmem>>, vector<128x128xf32>
    %cst_128 = arith.constant dense<0.000000e+00> : vector<1x128xf32>
    %247 = tpu.matmul %242, %246, %cst_128 {dimension_numbers = #tpu.dot_dimension_numbers<[1], [0], [0], [1], [0, 0, 1, 1], [], []>} : vector<1x128xf32>, vector<128x128xf32>, vector<1x128xf32> -> vector<1x128xf32>
    %cst_129 = arith.constant 3.200000e+01 : f32
    %248 = vector.broadcast %cst_129 : f32 to vector<1x128xf32>
    %249 = arith.divf %247, %248 : vector<1x128xf32>
    %cst_130 = arith.constant dense<0.000000e+00> : vector<1x128xf32>
    %250 = tpu.matmul %245, %246, %cst_130 {dimension_numbers = #tpu.dot_dimension_numbers<[1], [0], [0], [1], [0, 0, 1, 1], [], []>} : vector<1x128xf32>, vector<128x128xf32>, vector<1x128xf32> -> vector<1x128xf32>
    %cst_131 = arith.constant 3.200000e+01 : f32
    %251 = vector.broadcast %cst_131 : f32 to vector<1x128xf32>
    %252 = arith.divf %250, %251 : vector<1x128xf32>
    %253 = arith.mulf %249, %249 : vector<1x128xf32>
    %254 = arith.subf %252, %253 : vector<1x128xf32>
    %cst_132 = arith.constant 0.000000e+00 : f32
    %255 = vector.broadcast %cst_132 : f32 to vector<1x128xf32>
    %256 = arith.maximumf %254, %255 : vector<1x128xf32>
    %c0_133 = arith.constant 0 : index
    %c0_134 = arith.constant 0 : index
    %257 = vector.load %arg11[%c0_133, %c0_134] : memref<1x128xf32, #tpu.memory_space<vmem>>, vector<1x128xf32>
    %cst_135 = arith.constant 9.99999974E-6 : f32
    %258 = vector.broadcast %cst_135 : f32 to vector<1x128xf32>
    %259 = arith.addf %256, %258 : vector<1x128xf32>
    %260 = math.rsqrt %259 : vector<1x128xf32>
    %261 = arith.mulf %257, %260 : vector<1x128xf32>
    %c0_136 = arith.constant 0 : index
    %c0_137 = arith.constant 0 : index
    %262 = vector.load %arg12[%c0_136, %c0_137] : memref<1x128xf32, #tpu.memory_space<vmem>>, vector<1x128xf32>
    %263 = arith.mulf %249, %261 : vector<1x128xf32>
    %264 = arith.subf %262, %263 : vector<1x128xf32>
    %265 = vector.broadcast %261 : vector<1x128xf32> to vector<8x128xf32>
    %266 = arith.mulf %240, %265 : vector<8x128xf32>
    %267 = vector.broadcast %264 : vector<1x128xf32> to vector<8x128xf32>
    %268 = arith.addf %266, %267 : vector<8x128xf32>
    %cst_138 = arith.constant 0.000000e+00 : f32
    %269 = vector.broadcast %cst_138 : f32 to vector<8x128xf32>
    %270 = arith.cmpf oge, %268, %269 : vector<8x128xf32>
    %cst_139 = arith.constant 2.000000e-01 : f32
    %271 = vector.broadcast %cst_139 : f32 to vector<8x128xf32>
    %272 = arith.mulf %271, %268 : vector<8x128xf32>
    %273 = arith.select %270, %268, %272 : vector<8x128xi1>, vector<8x128xf32>
    %274 = arith.truncf %273 : vector<8x128xf32> to vector<8x128xbf16>
    %275 = tpu.iota {dimensions = array<i32: 0>} : vector<6x8xi32>
    %276 = tpu.iota {dimensions = array<i32: 1>} : vector<6x8xi32>
    %c0_i32_140 = arith.constant 0 : i32
    %277 = vector.broadcast %c0_i32_140 : i32 to vector<6x8xi32>
    %c3_i32_141 = arith.constant 3 : i32
    %278 = vector.broadcast %c3_i32_141 : i32 to vector<6x8xi32>
    %279 = arith.cmpi sge, %275, %278 : vector<6x8xi32>
    %c1_i32_142 = arith.constant 1 : i32
    %c0_i32_143 = arith.constant 0 : i32
    %280 = vector.broadcast %c1_i32_142 : i32 to vector<6x8xi32>
    %281 = vector.broadcast %c0_i32_143 : i32 to vector<6x8xi32>
    %282 = arith.select %279, %280, %281 : vector<6x8xi1>, vector<6x8xi32>
    %283 = arith.addi %277, %282 : vector<6x8xi32>
    %c3_i32_144 = arith.constant 3 : i32
    %284 = vector.broadcast %c3_i32_144 : i32 to vector<6x8xi32>
    %285 = arith.muli %283, %284 : vector<6x8xi32>
    %286 = arith.subi %275, %285 : vector<6x8xi32>
    %c1_i32_145 = arith.constant 1 : i32
    %287 = vector.broadcast %c1_i32_145 : i32 to vector<6x8xi32>
    %288 = arith.cmpi sge, %286, %287 : vector<6x8xi32>
    %c4_i32_146 = arith.constant 4 : i32
    %289 = vector.broadcast %c4_i32_146 : i32 to vector<6x8xi32>
    %290 = arith.muli %283, %289 : vector<6x8xi32>
    %c2_i32_147 = arith.constant 2 : i32
    %291 = vector.broadcast %c2_i32_147 : i32 to vector<6x8xi32>
    %292 = arith.muli %291, %286 : vector<6x8xi32>
    %293 = arith.addi %290, %292 : vector<6x8xi32>
    %c1_i32_148 = arith.constant 1 : i32
    %294 = vector.broadcast %c1_i32_148 : i32 to vector<6x8xi32>
    %295 = arith.subi %293, %294 : vector<6x8xi32>
    %296 = arith.cmpi eq, %276, %295 : vector<6x8xi32>
    %297 = arith.andi %288, %296 : vector<6x8xi1>
    %cst_149 = arith.constant 1.000000e+00 : f32
    %cst_150 = arith.constant 0.000000e+00 : f32
    %298 = vector.broadcast %cst_149 : f32 to vector<6x8xf32>
    %299 = vector.broadcast %cst_150 : f32 to vector<6x8xf32>
    %300 = arith.select %297, %298, %299 : vector<6x8xi1>, vector<6x8xf32>
    %c1_i32_151 = arith.constant 1 : i32
    %301 = vector.broadcast %c1_i32_151 : i32 to vector<6x8xi32>
    %302 = arith.cmpi sle, %286, %301 : vector<6x8xi32>
    %c4_i32_152 = arith.constant 4 : i32
    %303 = vector.broadcast %c4_i32_152 : i32 to vector<6x8xi32>
    %304 = arith.muli %283, %303 : vector<6x8xi32>
    %c2_i32_153 = arith.constant 2 : i32
    %305 = vector.broadcast %c2_i32_153 : i32 to vector<6x8xi32>
    %306 = arith.muli %305, %286 : vector<6x8xi32>
    %307 = arith.addi %304, %306 : vector<6x8xi32>
    %308 = arith.cmpi eq, %276, %307 : vector<6x8xi32>
    %309 = arith.andi %302, %308 : vector<6x8xi1>
    %cst_154 = arith.constant 1.000000e+00 : f32
    %cst_155 = arith.constant 0.000000e+00 : f32
    %310 = vector.broadcast %cst_154 : f32 to vector<6x8xf32>
    %311 = vector.broadcast %cst_155 : f32 to vector<6x8xf32>
    %312 = arith.select %309, %310, %311 : vector<6x8xi1>, vector<6x8xf32>
    %313 = arith.truncf %300 : vector<6x8xf32> to vector<6x8xbf16>
    %314 = arith.truncf %312 : vector<6x8xf32> to vector<6x8xbf16>
    %cst_156 = arith.constant dense<0.000000e+00> : vector<6x128xf32>
    %315 = tpu.matmul %313, %274, %cst_156 {dimension_numbers = #tpu.dot_dimension_numbers<[1], [0], [0], [1], [0, 0, 1, 1], [], []>} : vector<6x8xbf16>, vector<8x128xbf16>, vector<6x128xf32> -> vector<6x128xf32>
    %316 = arith.truncf %315 : vector<6x128xf32> to vector<6x128xbf16>
    %cst_157 = arith.constant dense<0.000000e+00> : vector<6x128xf32>
    %317 = tpu.matmul %314, %274, %cst_157 {dimension_numbers = #tpu.dot_dimension_numbers<[1], [0], [0], [1], [0, 0, 1, 1], [], []>} : vector<6x8xbf16>, vector<8x128xbf16>, vector<6x128xf32> -> vector<6x128xf32>
    %318 = arith.truncf %317 : vector<6x128xf32> to vector<6x128xbf16>
    %c0_158 = arith.constant 0 : index
    %c0_159 = arith.constant 0 : index
    %c0_160 = arith.constant 0 : index
    %319 = vector.load %arg6[%c0_158, %c0_159, %c0_160] : memref<4x128x128xbf16, #tpu.memory_space<vmem>>, vector<1x128x128xbf16>
    %320 = vector.shape_cast %319 : vector<1x128x128xbf16> to vector<128x128xbf16>
    %cst_161 = arith.constant dense<0.000000e+00> : vector<6x128xf32>
    %321 = tpu.matmul %316, %320, %cst_161 {dimension_numbers = #tpu.dot_dimension_numbers<[1], [0], [0], [1], [0, 0, 1, 1], [], []>} : vector<6x128xbf16>, vector<128x128xbf16>, vector<6x128xf32> -> vector<6x128xf32>
    %c1_162 = arith.constant 1 : index
    %c0_163 = arith.constant 0 : index
    %c0_164 = arith.constant 0 : index
    %322 = vector.load %arg6[%c1_162, %c0_163, %c0_164] : memref<4x128x128xbf16, #tpu.memory_space<vmem>>, vector<1x128x128xbf16>
    %323 = vector.shape_cast %322 : vector<1x128x128xbf16> to vector<128x128xbf16>
    %cst_165 = arith.constant dense<0.000000e+00> : vector<6x128xf32>
    %324 = tpu.matmul %318, %323, %cst_165 {dimension_numbers = #tpu.dot_dimension_numbers<[1], [0], [0], [1], [0, 0, 1, 1], [], []>} : vector<6x128xbf16>, vector<128x128xbf16>, vector<6x128xf32> -> vector<6x128xf32>
    %325 = arith.addf %321, %324 : vector<6x128xf32>
    %c2_166 = arith.constant 2 : index
    %c0_167 = arith.constant 0 : index
    %c0_168 = arith.constant 0 : index
    %326 = vector.load %arg6[%c2_166, %c0_167, %c0_168] : memref<4x128x128xbf16, #tpu.memory_space<vmem>>, vector<1x128x128xbf16>
    %327 = vector.shape_cast %326 : vector<1x128x128xbf16> to vector<128x128xbf16>
    %cst_169 = arith.constant dense<0.000000e+00> : vector<6x128xf32>
    %328 = tpu.matmul %316, %327, %cst_169 {dimension_numbers = #tpu.dot_dimension_numbers<[1], [0], [0], [1], [0, 0, 1, 1], [], []>} : vector<6x128xbf16>, vector<128x128xbf16>, vector<6x128xf32> -> vector<6x128xf32>
    %c3_170 = arith.constant 3 : index
    %c0_171 = arith.constant 0 : index
    %c0_172 = arith.constant 0 : index
    %329 = vector.load %arg6[%c3_170, %c0_171, %c0_172] : memref<4x128x128xbf16, #tpu.memory_space<vmem>>, vector<1x128x128xbf16>
    %330 = vector.shape_cast %329 : vector<1x128x128xbf16> to vector<128x128xbf16>
    %cst_173 = arith.constant dense<0.000000e+00> : vector<6x128xf32>
    %331 = tpu.matmul %318, %330, %cst_173 {dimension_numbers = #tpu.dot_dimension_numbers<[1], [0], [0], [1], [0, 0, 1, 1], [], []>} : vector<6x128xbf16>, vector<128x128xbf16>, vector<6x128xf32> -> vector<6x128xf32>
    %332 = arith.addf %328, %331 : vector<6x128xf32>
    %333 = tpu.iota {dimensions = array<i32: 0>} : vector<4x6xi32>
    %334 = tpu.iota {dimensions = array<i32: 1>} : vector<4x6xi32>
    %c0_i32_174 = arith.constant 0 : i32
    %335 = vector.broadcast %c0_i32_174 : i32 to vector<4x6xi32>
    %c2_i32_175 = arith.constant 2 : i32
    %336 = vector.broadcast %c2_i32_175 : i32 to vector<4x6xi32>
    %337 = arith.cmpi sge, %333, %336 : vector<4x6xi32>
    %c1_i32_176 = arith.constant 1 : i32
    %c0_i32_177 = arith.constant 0 : i32
    %338 = vector.broadcast %c1_i32_176 : i32 to vector<4x6xi32>
    %339 = vector.broadcast %c0_i32_177 : i32 to vector<4x6xi32>
    %340 = arith.select %337, %338, %339 : vector<4x6xi1>, vector<4x6xi32>
    %341 = arith.addi %335, %340 : vector<4x6xi32>
    %342 = arith.addi %333, %341 : vector<4x6xi32>
    %343 = arith.cmpi eq, %334, %342 : vector<4x6xi32>
    %cst_178 = arith.constant 1.000000e+00 : f32
    %cst_179 = arith.constant 0.000000e+00 : f32
    %344 = vector.broadcast %cst_178 : f32 to vector<4x6xf32>
    %345 = vector.broadcast %cst_179 : f32 to vector<4x6xf32>
    %346 = arith.select %343, %344, %345 : vector<4x6xi1>, vector<4x6xf32>
    %c1_i32_180 = arith.constant 1 : i32
    %347 = vector.broadcast %c1_i32_180 : i32 to vector<4x6xi32>
    %348 = arith.addi %342, %347 : vector<4x6xi32>
    %349 = arith.cmpi eq, %334, %348 : vector<4x6xi32>
    %cst_181 = arith.constant 1.000000e+00 : f32
    %cst_182 = arith.constant 0.000000e+00 : f32
    %350 = vector.broadcast %cst_181 : f32 to vector<4x6xf32>
    %351 = vector.broadcast %cst_182 : f32 to vector<4x6xf32>
    %352 = arith.select %349, %350, %351 : vector<4x6xi1>, vector<4x6xf32>
    %cst_183 = arith.constant dense<0.000000e+00> : vector<4x128xf32>
    %353 = tpu.matmul %346, %325, %cst_183 {dimension_numbers = #tpu.dot_dimension_numbers<[1], [0], [0], [1], [0, 0, 1, 1], [], []>} : vector<4x6xf32>, vector<6x128xf32>, vector<4x128xf32> -> vector<4x128xf32>
    %cst_184 = arith.constant dense<0.000000e+00> : vector<4x128xf32>
    %354 = tpu.matmul %352, %332, %cst_184 {dimension_numbers = #tpu.dot_dimension_numbers<[1], [0], [0], [1], [0, 0, 1, 1], [], []>} : vector<4x6xf32>, vector<6x128xf32>, vector<4x128xf32> -> vector<4x128xf32>
    %355 = arith.addf %353, %354 : vector<4x128xf32>
    %cst_185 = arith.constant dense<0.000000e+00> : vector<128xf32>
    %356 = vector.multi_reduction <add>, %355, %cst_185 [0] : vector<4x128xf32> to vector<128xf32>
    %357 = vector.shape_cast %356 : vector<128xf32> to vector<1x128xf32>
    %358 = arith.mulf %355, %355 : vector<4x128xf32>
    %cst_186 = arith.constant dense<0.000000e+00> : vector<128xf32>
    %359 = vector.multi_reduction <add>, %358, %cst_186 [0] : vector<4x128xf32> to vector<128xf32>
    %360 = vector.shape_cast %359 : vector<128xf32> to vector<1x128xf32>
    %c0_187 = arith.constant 0 : index
    %c0_188 = arith.constant 0 : index
    %361 = vector.load %arg13[%c0_187, %c0_188] : memref<128x128xf32, #tpu.memory_space<vmem>>, vector<128x128xf32>
    %cst_189 = arith.constant dense<0.000000e+00> : vector<1x128xf32>
    %362 = tpu.matmul %357, %361, %cst_189 {dimension_numbers = #tpu.dot_dimension_numbers<[1], [0], [0], [1], [0, 0, 1, 1], [], []>} : vector<1x128xf32>, vector<128x128xf32>, vector<1x128xf32> -> vector<1x128xf32>
    %cst_190 = arith.constant 8.000000e+00 : f32
    %363 = vector.broadcast %cst_190 : f32 to vector<1x128xf32>
    %364 = arith.divf %362, %363 : vector<1x128xf32>
    %cst_191 = arith.constant dense<0.000000e+00> : vector<1x128xf32>
    %365 = tpu.matmul %360, %361, %cst_191 {dimension_numbers = #tpu.dot_dimension_numbers<[1], [0], [0], [1], [0, 0, 1, 1], [], []>} : vector<1x128xf32>, vector<128x128xf32>, vector<1x128xf32> -> vector<1x128xf32>
    %cst_192 = arith.constant 8.000000e+00 : f32
    %366 = vector.broadcast %cst_192 : f32 to vector<1x128xf32>
    %367 = arith.divf %365, %366 : vector<1x128xf32>
    %368 = arith.mulf %364, %364 : vector<1x128xf32>
    %369 = arith.subf %367, %368 : vector<1x128xf32>
    %cst_193 = arith.constant 0.000000e+00 : f32
    %370 = vector.broadcast %cst_193 : f32 to vector<1x128xf32>
    %371 = arith.maximumf %369, %370 : vector<1x128xf32>
    %c0_194 = arith.constant 0 : index
    %c0_195 = arith.constant 0 : index
    %372 = vector.load %arg14[%c0_194, %c0_195] : memref<1x128xf32, #tpu.memory_space<vmem>>, vector<1x128xf32>
    %cst_196 = arith.constant 9.99999974E-6 : f32
    %373 = vector.broadcast %cst_196 : f32 to vector<1x128xf32>
    %374 = arith.addf %371, %373 : vector<1x128xf32>
    %375 = math.rsqrt %374 : vector<1x128xf32>
    %376 = arith.mulf %372, %375 : vector<1x128xf32>
    %c0_197 = arith.constant 0 : index
    %c0_198 = arith.constant 0 : index
    %377 = vector.load %arg15[%c0_197, %c0_198] : memref<1x128xf32, #tpu.memory_space<vmem>>, vector<1x128xf32>
    %378 = arith.mulf %364, %376 : vector<1x128xf32>
    %379 = arith.subf %377, %378 : vector<1x128xf32>
    %380 = vector.broadcast %376 : vector<1x128xf32> to vector<4x128xf32>
    %381 = arith.mulf %355, %380 : vector<4x128xf32>
    %382 = vector.broadcast %379 : vector<1x128xf32> to vector<4x128xf32>
    %383 = arith.addf %381, %382 : vector<4x128xf32>
    %cst_199 = arith.constant 0.000000e+00 : f32
    %384 = vector.broadcast %cst_199 : f32 to vector<4x128xf32>
    %385 = arith.cmpf oge, %383, %384 : vector<4x128xf32>
    %cst_200 = arith.constant 2.000000e-01 : f32
    %386 = vector.broadcast %cst_200 : f32 to vector<4x128xf32>
    %387 = arith.mulf %386, %383 : vector<4x128xf32>
    %388 = arith.select %385, %383, %387 : vector<4x128xi1>, vector<4x128xf32>
    %c0_201 = arith.constant 0 : index
    %c0_202 = arith.constant 0 : index
    %389 = vector.load %arg16[%c0_201, %c0_202] : memref<4x128xf32, #tpu.memory_space<vmem>>, vector<4x128xf32>
    tpu.vector_store %arg16[%c0_201, %c0_202], %388 {strides = array<i32>} : memref<4x128xf32, #tpu.memory_space<vmem>>, vector<4x128xf32>,
    return
  }
  func.func @transform_0(%arg0: i32) -> (i32, i32) {
    %c0_i32 = arith.constant 0 : i32
    %c0_i32_0 = arith.constant 0 : i32
    %c0_i32_1 = arith.constant 0 : i32
    return %c0_i32, %c0_i32_0 : i32, i32
  }
  func.func @transform_1(%arg0: i32) -> (i32, i32) {
    %c0_i32 = arith.constant 0 : i32
    %c0_i32_0 = arith.constant 0 : i32
    %c0_i32_1 = arith.constant 0 : i32
    return %c0_i32, %c0_i32_0 : i32, i32
  }
  func.func @transform_2(%arg0: i32) -> (i32, i32, i32) {
    %c0_i32 = arith.constant 0 : i32
    %c0_i32_0 = arith.constant 0 : i32
    %c0_i32_1 = arith.constant 0 : i32
    %c0_i32_2 = arith.constant 0 : i32
    return %c0_i32, %c0_i32_0, %c0_i32_1 : i32, i32, i32
  }
  func.func @transform_3(%arg0: i32) -> (i32, i32, i32) {
    %c0_i32 = arith.constant 0 : i32
    %c0_i32_0 = arith.constant 0 : i32
    %c0_i32_1 = arith.constant 0 : i32
    %c0_i32_2 = arith.constant 0 : i32
    return %c0_i32, %c0_i32_0, %c0_i32_1 : i32, i32, i32
  }
  func.func @transform_4(%arg0: i32) -> (i32, i32, i32) {
    %c0_i32 = arith.constant 0 : i32
    %c0_i32_0 = arith.constant 0 : i32
    %c0_i32_1 = arith.constant 0 : i32
    %c0_i32_2 = arith.constant 0 : i32
    return %c0_i32, %c0_i32_0, %c0_i32_1 : i32, i32, i32
  }
  func.func @transform_5(%arg0: i32) -> (i32, i32, i32) {
    %c0_i32 = arith.constant 0 : i32
    %c0_i32_0 = arith.constant 0 : i32
    %c0_i32_1 = arith.constant 0 : i32
    %c0_i32_2 = arith.constant 0 : i32
    return %c0_i32, %c0_i32_0, %c0_i32_1 : i32, i32, i32
  }
  func.func @transform_6(%arg0: i32) -> (i32, i32) {
    %c0_i32 = arith.constant 0 : i32
    %c0_i32_0 = arith.constant 0 : i32
    %c0_i32_1 = arith.constant 0 : i32
    return %c0_i32, %c0_i32_0 : i32, i32
  }
  func.func @transform_7(%arg0: i32) -> (i32, i32) {
    %c0_i32 = arith.constant 0 : i32
    %c0_i32_0 = arith.constant 0 : i32
    %c0_i32_1 = arith.constant 0 : i32
    return %c0_i32, %c0_i32_0 : i32, i32
  }
  func.func @transform_8(%arg0: i32) -> (i32, i32) {
    %c0_i32 = arith.constant 0 : i32
    %c0_i32_0 = arith.constant 0 : i32
    %c0_i32_1 = arith.constant 0 : i32
    return %c0_i32, %c0_i32_0 : i32, i32
  }
  func.func @transform_9(%arg0: i32) -> (i32, i32) {
    %c0_i32 = arith.constant 0 : i32
    %c0_i32_0 = arith.constant 0 : i32
    %c0_i32_1 = arith.constant 0 : i32
    return %c0_i32, %c0_i32_0 : i32, i32
  }
  func.func @transform_10(%arg0: i32) -> (i32, i32) {
    %c0_i32 = arith.constant 0 : i32
    %c0_i32_0 = arith.constant 0 : i32
    %c0_i32_1 = arith.constant 0 : i32
    return %c0_i32, %c0_i32_0 : i32, i32
  }
  func.func @transform_11(%arg0: i32) -> (i32, i32) {
    %c0_i32 = arith.constant 0 : i32
    %c0_i32_0 = arith.constant 0 : i32
    %c0_i32_1 = arith.constant 0 : i32
    return %c0_i32, %c0_i32_0 : i32, i32
  }
  func.func @transform_12(%arg0: i32) -> (i32, i32) {
    %c0_i32 = arith.constant 0 : i32
    %c0_i32_0 = arith.constant 0 : i32
    %c0_i32_1 = arith.constant 0 : i32
    return %c0_i32, %c0_i32_0 : i32, i32
  }
  func.func @transform_13(%arg0: i32) -> (i32, i32) {
    %c0_i32 = arith.constant 0 : i32
    %c0_i32_0 = arith.constant 0 : i32
    %c0_i32_1 = arith.constant 0 : i32
    return %c0_i32, %c0_i32_0 : i32, i32
  }
  func.func @transform_14(%arg0: i32) -> (i32, i32) {
    %c0_i32 = arith.constant 0 : i32
    %c0_i32_0 = arith.constant 0 : i32
    %c0_i32_1 = arith.constant 0 : i32
    return %c0_i32, %c0_i32_0 : i32, i32
  }
  func.func @transform_15(%arg0: i32) -> (i32, i32) {
    %c0_i32 = arith.constant 0 : i32
    %c0_i32_0 = arith.constant 0 : i32
    %c0_i32_1 = arith.constant 0 : i32
    return %c0_i32, %c0_i32_0 : i32, i32
  }
}

</mosaic_0001>

<bundles_post_ra>
// kernel: discriminator_forward.1
= control target key start
LH: loop header
LB: loop body
LE: loop exit
PB: predicated region body
PF: predicated region fallthrough
CT: control target
= control target key end

     0   :  { %v5380_v0 = vmov 0.0   ;;  %vm5381_vm0 = vmmov 0   ;;  %v576_v39 = vlaneseq  ;;  %vm615_vm2 = vcmask 277504   ;;  %s6399_s2 = inlined_call_operand.vmem [shape: bf16[4,128,128], index: 2, kind: input, shape index: {}]   ;;  %s6400_s1 = inlined_call_operand.vmem [shape: bf16[34,128], index: 1, kind: input, shape index: {}]   ;;  %s6401_s0 = inlined_call_operand.vmem [shape: bf16[34,128], index: 0, kind: input, shape index: {}]   ;;  %s6402_s3 = inlined_call_operand.vmem [shape: bf16[4,128,128], index: 3, kind: input, shape index: {}]   ;;  %s6403_s6 = inlined_call_operand.vmem [shape: f32[128,128], index: 6, kind: input, shape index: {}]   ;;  %s6404_s4 = inlined_call_operand.vmem [shape: bf16[4,128,128], index: 4, kind: input, shape index: {}]   ;;  %s6405_s7 = inlined_call_operand.vmem [shape: f32[1,128], index: 7, kind: input, shape index: {}]   ;;  %s6406_s8 = inlined_call_operand.vmem [shape: f32[1,128], index: 8, kind: input, shape index: {}]   ;;  %s6407_s9 = inlined_call_operand.vmem [shape: f32[128,128], index: 9, kind: input, shape index: {}]   ;;  %s6408_s5 = inlined_call_operand.vmem [shape: bf16[4,128,128], index: 5, kind: input, shape index: {}]   ;;  %s6409_s10 = inlined_call_operand.vmem [shape: f32[1,128], index: 10, kind: input, shape index: {}]   ;;  %s6410_s11 = inlined_call_operand.vmem [shape: f32[1,128], index: 11, kind: input, shape index: {}]   ;;  %s6411_s12 = inlined_call_operand.vmem [shape: f32[128,128], index: 12, kind: input, shape index: {}]   ;;  %s6412_s13 = inlined_call_operand.vmem [shape: f32[1,128], index: 13, kind: input, shape index: {}]   ;;  %s6413_s14 = inlined_call_operand.vmem [shape: f32[1,128], index: 14, kind: input, shape index: {}]   ;;  %s6414_s15 = inlined_call_operand.vmem [shape: f32[4,128], index: 15, kind: output, shape index: {}]  }
   0x1   :  { %4325 = vmatprep.subr.bf16.mxu0 %v5380_v0  ;;  %4381 = vmatprep.subr.bf16.mxu1 %v5380_v0  ;;  %v5240_v1 = vld [vmem:[%s6399_s2 + $0x40] sm:$0xff]   ;;  %v5242_v3 = vld [vmem:[%s6399_s2 + $0x48] sm:$0xff]   ;;  %v5244_v5 = vld [vmem:[%s6399_s2 + $0x50] sm:$0xff]   ;;  %vm628_vm4 = vcmask 1041408  }
   0x2   :  { %v5241_v2 = vld [vmem:[%s6399_s2 + $0xc0] sm:$0xff]   ;;  %4341 = vmatprep.mubr.msk.bf16.mxu0 %vm5381_vm0, %v5380_v0  ;;  %4397 = vmatprep.mubr.msk.bf16.mxu1 %vm5381_vm0, %v5380_v0  ;;  %v5243_v4 = vld [vmem:[%s6399_s2 + $0xc8] sm:$0xff]   ;;  %v5245_v6 = vld [vmem:[%s6399_s2 + $0xd0] sm:$0xff]   ;;  %v5635_v40 = vshrl.u32 %v576_v39, 7  ;;  %v5637_v41 = vand.u32 127, %v576_v39 }
   0x3   :  { %4326 = vmatpush3.bf16.msra.mxu0 %v5240_v1  ;;  %4382 = vmatpush3.bf16.msra.mxu1 %v5241_v2  ;;  %v5246_v7 = vld [vmem:[%s6399_s2 + $0x58] sm:$0xff]   ;;  %v5248_v9 = vld [vmem:[%s6399_s2 + $0x60] sm:$0xff]   ;;  %v5250_v11 = vld [vmem:[%s6399_s2 + $0x68] sm:$0xff]  }
   0x4   :  { %4327 = vmatprep.subr.bf16.mxu0 %v5380_v0  ;;  %4383 = vmatprep.subr.bf16.mxu1 %v5380_v0  ;;  %v5247_v8 = vld [vmem:[%s6399_s2 + $0xd8] sm:$0xff]   ;;  %v5249_v10 = vld [vmem:[%s6399_s2 + $0xe0] sm:$0xff]   ;;  %v5251_v12 = vld [vmem:[%s6399_s2 + $0xe8] sm:$0xff]   ;;  %v603_v42 = vadd.s32 1, %v5635_v40  ;;  %v5647_v52 = vadd.s32 16, %v5635_v40  ;;  %v5650_v55 = vadd.s32 8, %v5635_v40  ;;  %vm595_vm7 = vcmp.eq.s32.totalorder %v5637_v41, %v5635_v40 }
   0x5   :  { %v5252_v13 = vld [vmem:[%s6399_s2 + $0x70] sm:$0xff]   ;;  %v5254_v15 = vld [vmem:[%s6399_s2 + $0x78] sm:$0xff]   ;;  %v5256_v17 = vld [vmem:[%s6400_s1] sm:$0xff]   ;;  %v580_v56 = vadd.s32 24, %v5635_v40  ;;  %vm843_vm12 = vcmp.ge.s32.totalorder %v5635_v40, 1 }
   0x6   :  { %v5253_v14 = vld [vmem:[%s6399_s2 + $0xf0] sm:$0xff]   ;;  %v5255_v16 = vld [vmem:[%s6399_s2 + $0xf8] sm:$0xff]   ;;  %v5257_v18 = vld [vmem:[%s6399_s2] sm:$0xff]   ;;  %vm607_vm1 = vcmp.eq.s32.totalorder %v5637_v41, %v603_v42  ;;  %v593_v57 = vadd.s32 1, %v5647_v52  ;;  %v5655_v63 = vadd.s32 1, %v5650_v55  ;;  %vm596_vm8 = vcmp.eq.s32.totalorder %v5637_v41, %v5650_v55 }
   0x7   :  { %4328 = vmatpush3.bf16.msra.mxu0 %v5242_v3  ;;  %4384 = vmatpush3.bf16.msra.mxu1 %v5243_v4  ;;  %v5258_v19 = vld [vmem:[%s6399_s2 + $0x80] sm:$0xff]   ;;  %v5259_v20 = vld [vmem:[%s6399_s2 + $0x8] sm:$0xff]   ;;  %v5261_v23 = vld [vmem:[%s6399_s2 + $0x10] sm:$0xff]   ;;  %v5642_v43 = vsel %vm607_vm1, 1.0, %v5380_v0  ;;  %v594_v1 = vadd.s32 1, %v580_v56  ;;  %vm832_vm11 = vcmp.ge.s32.totalorder %v5650_v55, 9 }
   0x8   :  { %4329 = vmatprep.subr.bf16.mxu0 %v5380_v0  ;;  %4385 = vmatprep.subr.bf16.mxu1 %v5380_v0  ;;  %v5260_v21 = vld [vmem:[%s6399_s2 + $0x88] sm:$0xff]   ;;  %v5262_v24 = vld [vmem:[%s6399_s2 + $0x90] sm:$0xff]   ;;  %v5263_v25 = vld [vmem:[%s6399_s2 + $0x18] sm:$0xff]   ;;  %vm608_vm3 = vcmp.eq.s32.totalorder %v5637_v41, %v5655_v63  ;;  %vm597_vm9 = vcmp.eq.s32.totalorder %v5637_v41, %v593_v57 }
   0x9   :  { %v5265_v22 = vld [vmem:[%s6400_s1 + $0x8] sm:$0xff]   ;;  %v5264_v26 = vld [vmem:[%s6399_s2 + $0x98] sm:$0xff]   ;;  %v5270_v27 = vld [vmem:[%s6400_s1 + $0x10] ss:$0 sps:$4 sm:$0x11]   ;;  %vm598_vm10 = vcmp.eq.s32.totalorder %v5637_v41, %v594_v1 }
   0xa   :  { %v5266_v28 = vld [vmem:[%s6399_s2 + $0x20] sm:$0xff]   ;;  %v5268_v30 = vld [vmem:[%s6399_s2 + $0x28] sm:$0xff]   ;;  %v5271_v32 = vld [vmem:[%s6399_s2 + $0x30] sm:$0xff]  }
   0xb   :  { %4330 = vmatpush3.bf16.msra.mxu0 %v5244_v5  ;;  %4386 = vmatpush3.bf16.msra.mxu1 %v5245_v6  ;;  %v5267_v29 = vld [vmem:[%s6399_s2 + $0xa0] sm:$0xff]   ;;  %v5269_v31 = vld [vmem:[%s6399_s2 + $0xa8] sm:$0xff]   ;;  %v5272_v33 = vld [vmem:[%s6399_s2 + $0xb0] sm:$0xff]   ;;  %v605_v5 = vadd.s32 1, %v593_v57 }
   0xc   :  { %4331 = vmatprep.subr.bf16.mxu0 %v5380_v0  ;;  %4387 = vmatprep.subr.bf16.mxu1 %v5380_v0  ;;  %v5273_v34 = vld [vmem:[%s6399_s2 + $0x38] sm:$0xff]   ;;  %v5275_v36 = vld [vmem:[%s6401_s0] sm:$0xff]   ;;  %v5276_v37 = vld [vmem:[%s6401_s0 + $0x8] sm:$0xff]  }
   0xd   :  { %v5274_v35 = vld [vmem:[%s6399_s2 + $0xb8] sm:$0xff]   ;;  %v5277_v38 = vld [vmem:[%s6401_s0 + $0x10] ss:$0 sps:$4 sm:$0x11]   ;;  %vm609_vm5 = vcmp.eq.s32.totalorder %v5637_v41, %v605_v5  ;;  %v5279_v42 = vld [vmem:[%s6402_s3 + $0xc0] sm:$0xff]  }
   0xf   :  { %4332 = vmatpush3.bf16.msra.mxu0 %v5246_v7  ;;  %4388 = vmatpush3.bf16.msra.mxu1 %v5247_v8  ;;  %v606_v8 = vadd.s32 1, %v594_v1 }
  0x10   :  { %4333 = vmatprep.subr.bf16.mxu0 %v5380_v0  ;;  %4389 = vmatprep.subr.bf16.mxu1 %v5380_v0 }
  0x11   :  { %vm610_vm6 = vcmp.eq.s32.totalorder %v5637_v41, %v606_v8 }
  0x13   :  { %4334 = vmatpush3.bf16.msra.mxu0 %v5248_v9  ;;  %4390 = vmatpush3.bf16.msra.mxu1 %v5249_v10 }
  0x14   :  { %4335 = vmatprep.subr.bf16.mxu0 %v5380_v0  ;;  %4391 = vmatprep.subr.bf16.mxu1 %v5380_v0 }
  0x17   :  { %4336 = vmatpush3.bf16.msra.mxu0 %v5250_v11  ;;  %4392 = vmatpush3.bf16.msra.mxu1 %v5251_v12  ;;  %v5661_v12 = vsel %vm608_vm3, 1.0, %v5380_v0  ;;  %vm883_vm3 = vcmask 261120  }
  0x18   :  { %4337 = vmatprep.subr.bf16.mxu0 %v5380_v0  ;;  %4393 = vmatprep.subr.bf16.mxu1 %v5380_v0 }
  0x1b   :  { %4338 = vmatpush3.bf16.msra.mxu0 %v5252_v13  ;;  %4394 = vmatpush3.bf16.msra.mxu1 %v5253_v14 }
  0x1c   :  { %4339 = vmatprep.subr.bf16.mxu0 %v5380_v0  ;;  %4395 = vmatprep.subr.bf16.mxu1 %v5380_v0 }
  0x1f   :  { %4340 = vmatpush3.bf16.msra.mxu0 %v5254_v15  ;;  %4396 = vmatpush3.bf16.msra.mxu1 %v5255_v16  ;;  %v613_v15 = vsel %vm609_vm5, 1.0, %v5380_v0 }
  0x20   :  { %4353 = vmatprep.subr.bf16.mxu0 %v5380_v0  ;;  %4409 = vmatprep.subr.bf16.mxu1 %v5380_v0 }
  0x22   :  { %4342 = vmatmul.mubr.bf16.vlgmr.msra.gmra.mrb[0].mxu0 %v5256_v17  ;;  %4398 = vmatmul.mubr.bf16.vlgmr.msra.gmra.mrb[0].mxu1 %v5256_v17 }
  0x23   :  { %4354 = vmatpush3.bf16.msra.mxu0 %v5257_v18  ;;  %4410 = vmatpush3.bf16.msra.mxu1 %v5258_v19  ;;  %v614_v19 = vsel %vm610_vm6, 1.0, %v5380_v0 }
  0x24   :  { %4355 = vmatprep.subr.bf16.mxu0 %v5380_v0  ;;  %4411 = vmatprep.subr.bf16.mxu1 %v5380_v0 }
  0x25   :  { %4345 = vmatprep.mubr.msk.bf16.mxu0 %vm5381_vm0, %v5380_v0  ;;  %4401 = vmatprep.mubr.msk.bf16.mxu1 %vm5381_vm0, %v5380_v0 }
  0x27   :  { %4356 = vmatpush3.bf16.msra.mxu0 %v5259_v20  ;;  %4412 = vmatpush3.bf16.msra.mxu1 %v5260_v21  ;;  %v5674_v20 = vsel %vm595_vm7, 1.0, %v5380_v0  ;;  %v600_v21 = vsel %vm596_vm8, 1.0, %v5380_v0 }
  0x28   :  { %4357 = vmatprep.subr.bf16.mxu0 %v5380_v0  ;;  %4413 = vmatprep.subr.bf16.mxu1 %v5380_v0 }
  0x2a   :  { %4346 = vmatmul.mubr.bf16.gmra.mrb[4].mxu0 %v5265_v22  ;;  %4402 = vmatmul.mubr.bf16.gmra.mrb[4].mxu1 %v5265_v22  ;;  %v601_v22 = vsel %vm597_vm9, 1.0, %v5380_v0 }
  0x2b   :  { %4358 = vmatpush3.bf16.msra.mxu0 %v5261_v23  ;;  %4414 = vmatpush3.bf16.msra.mxu1 %v5262_v24  ;;  %v602_v23 = vsel %vm598_vm10, 1.0, %v5380_v0  ;;  %v5382_v24 = vmov 0  }
  0x2c   :  { %4359 = vmatprep.subr.bf16.mxu0 %v5380_v0  ;;  %4415 = vmatprep.subr.bf16.mxu1 %v5380_v0 }
  0x2d   :  { %4349 = vmatprep.mubr.msk.bf16.mxu0 %vm5381_vm0, %v5380_v0  ;;  %4405 = vmatprep.mubr.msk.bf16.mxu1 %vm5381_vm0, %v5380_v0 }
  0x2f   :  { %4360 = vmatpush3.bf16.msra.mxu0 %v5263_v25  ;;  %4416 = vmatpush3.bf16.msra.mxu1 %v5264_v26  ;;  %v835_v25 = vsel %vm832_vm11, 1, %v5382_v24 }
  0x30   :  { %4361 = vmatprep.subr.bf16.mxu0 %v5380_v0  ;;  %4417 = vmatprep.subr.bf16.mxu1 %v5380_v0  ;;  %v838_v26 = vmul.u32 9, %v835_v25 }
  0x32   :  { %4350 = vmatmul.mubr.bf16.gmra.mrb[8].mxu0 %v5270_v27  ;;  %4406 = vmatmul.mubr.bf16.gmra.mrb[8].mxu1 %v5270_v27  ;;  %v841_v27 = vsub.s32 %v5650_v55, %v838_v26 }
  0x33   :  { %4362 = vmatpush3.bf16.msra.mxu0 %v5266_v28  ;;  %4418 = vmatpush3.bf16.msra.mxu1 %v5267_v29  ;;  %v847_v28 = vmul.u32 16, %v835_v25 }
  0x34   :  { %4363 = vmatprep.subr.bf16.mxu0 %v5380_v0  ;;  %4419 = vmatprep.subr.bf16.mxu1 %v5380_v0  ;;  %v850_v29 = vmul.u32 2, %v841_v27  ;;  %vm844_vm13 = vcmp.ge.s32.totalorder %v841_v27, 1  ;;  %vm868_vm5 = vcmp.le.s32.totalorder %v841_v27, 7 }
  0x35   :  { %4369 = vmatprep.mubr.msk.bf16.mxu0 %vm5381_vm0, %v5380_v0  ;;  %4425 = vmatprep.mubr.msk.bf16.mxu1 %vm5381_vm0, %v5380_v0 }
  0x37   :  { %4364 = vmatpush3.bf16.msra.mxu0 %v5268_v30  ;;  %4420 = vmatpush3.bf16.msra.mxu1 %v5269_v31  ;;  %v849_v30 = vmul.u32 2, %v5635_v40  ;;  %v853_v31 = vadd.s32 %v850_v29, %v847_v28 }
  0x38   :  { %4365 = vmatprep.subr.bf16.mxu0 %v5380_v0  ;;  %4421 = vmatprep.subr.bf16.mxu1 %v5380_v0 }
  0x39   :  { %vm871_vm6 = vcmp.eq.s32.totalorder %v5637_v41, %v853_v31  ;;  %vm870_vm7 = vcmp.eq.s32.totalorder %v5637_v41, %v849_v30 }
  0x3a   :  { %vm874_vm8 = vmand %vm868_vm5, %vm871_vm6  ;;  %vm1840_vm5 = vcmp.ge.s32.totalorder %v5635_v40, 5 }
  0x3b   :  { %4366 = vmatpush3.bf16.msra.mxu0 %v5271_v32  ;;  %4422 = vmatpush3.bf16.msra.mxu1 %v5272_v33  ;;  %v3744_v32 = vadd.s32 4294967295, %v849_v30  ;;  %v3745_v33 = vadd.s32 4294967295, %v853_v31 }
  0x3c   :  { %4367 = vmatprep.subr.bf16.mxu0 %v5380_v0  ;;  %4423 = vmatprep.subr.bf16.mxu1 %v5380_v0 }
  0x3d   :  { %vm858_vm14 = vcmp.eq.s32.totalorder %v5637_v41, %v3744_v32  ;;  %vm859_vm15 = vcmp.eq.s32.totalorder %v5637_v41, %v3745_v33 }
  0x3e   :  { %vm861_vm1 = vmand %vm843_vm12, %vm858_vm14 }
  0x3f   :  { %4368 = vmatpush3.bf16.msra.mxu0 %v5273_v34  ;;  %4424 = vmatpush3.bf16.msra.mxu1 %v5274_v35  ;;  %v864_v34 = vsel %vm861_vm1, 1.0, %v5380_v0 }
  0x42   :  { %4370 = vmatmul.mubr.bf16.vlgmr.msra.gmra.mrb[0].mxu0 %v5275_v36  ;;  %4426 = vmatmul.mubr.bf16.vlgmr.msra.gmra.mrb[0].mxu1 %v5275_v36 }
  0x43   :  { %4373 = vmatprep.mubr.msk.bf16.mxu0 %vm5381_vm0, %v5380_v0  ;;  %4429 = vmatprep.mubr.msk.bf16.mxu1 %vm5381_vm0, %v5380_v0 }
  0x4a   :  { %4374 = vmatmul.mubr.bf16.gmra.mrb[4].mxu0 %v5276_v37  ;;  %4430 = vmatmul.mubr.bf16.gmra.mrb[4].mxu1 %v5276_v37  ;;  %v876_v37 = vsel %vm870_vm7, 1.0, %v5380_v0 }
  0x4b   :  { %4377 = vmatprep.mubr.msk.bf16.mxu0 %vm5381_vm0, %v5380_v0  ;;  %4433 = vmatprep.mubr.msk.bf16.mxu1 %vm5381_vm0, %v5380_v0 }
  0x52   :  { %4378 = vmatmul.mubr.bf16.gmra.mrb[8].mxu0 %v5277_v38  ;;  %4434 = vmatmul.mubr.bf16.gmra.mrb[8].mxu1 %v5277_v38  ;;  %v877_v38 = vsel %vm874_vm8, 1.0, %v5380_v0 }
  0x53   :  { %4447 = vmatprep.mubr.msk.f32.mxu0 %vm615_vm2, %v5642_v43  ;;  %v881_v39 = vpack.c.bf16 %v877_v38, %v876_v37  ;;  %v5297_v37 = vld [vmem:[%s6402_s3 + $0x88] sm:$0xff]   ;;  %v5298_v38 = vld [vmem:[%s6402_s3 + $0x10] sm:$0xff]  }
 0x115   :  { %v312_v44 = vpop.f32.mrb[0].mxu0  ;;  %v554_v45 = vpop.f32.mrb[0].mxu1 }
 0x116   :  { %v4371_v46 = vpop.f32.mrb[1].mxu0  ;;  %v4427_v47 = vpop.f32.mrb[1].mxu1 }
 0x117   :  { %v315_v48 = vpop.f32.mrb[2].mxu0  ;;  %v557_v50 = vpop.f32.mrb[2].mxu1  ;;  %v5285_v46 = vld [vmem:[%s6402_s3 + $0xd8] sm:$0xff]   ;;  %v5287_v47 = vld [vmem:[%s6402_s3 + $0xe0] sm:$0xff]  }
 0x118   :  { %v5009_v49 = vpack.c.bf16 %v315_v48, %v312_v44  ;;  %v4372_v51 = vpop.f32.mrb[3].mxu0  ;;  %v5001_v53 = vpack.c.bf16 %v557_v50, %v554_v45  ;;  %v4428_v54 = vpop.f32.mrb[3].mxu1  ;;  %v5281_v44 = vld [vmem:[%s6402_s3 + $0xc8] sm:$0xff]   ;;  %v5283_v45 = vld [vmem:[%s6402_s3 + $0xd0] sm:$0xff]  }
 0x119   :  { %v5289_v48 = vld [vmem:[%s6402_s3 + $0xe8] sm:$0xff]  }
 0x11a   :  { %5002 = vmatprep.subr.bf16.mxu0 %v5001_v53 }
 0x11b   :  { %5004 = vmatpush3.bf16.msra.mxu0 %v5001_v53 }
 0x11d   :  { %v320_v58 = vpop.f32.mrb[4].mxu0  ;;  %v562_v59 = vpop.f32.mrb[4].mxu1 }
 0x11e   :  { %v4375_v60 = vpop.f32.mrb[5].mxu0  ;;  %v4431_v61 = vpop.f32.mrb[5].mxu1 }
 0x11f   :  { %v323_v62 = vpop.f32.mrb[6].mxu0  ;;  %v565_v3 = vpop.f32.mrb[6].mxu1 }
 0x120   :  { %v5013_v2 = vpack.c.bf16 %v323_v62, %v320_v58  ;;  %v4376_v4 = vpop.f32.mrb[7].mxu0  ;;  %v5005_v6 = vpack.c.bf16 %v565_v3, %v562_v59  ;;  %v4432_v7 = vpop.f32.mrb[7].mxu1 }
 0x122   :  { %5006 = vmatprep.subr.bf16.mxu0 %v5005_v6 }
 0x123   :  { %5008 = vmatpush3.bf16.msra.mxu0 %v5005_v6 }
 0x125   :  { %v328_v9 = vpop.f32.mrb[8].mxu0  ;;  %v570_v10 = vpop.f32.mrb[8].mxu1 }
 0x126   :  { %v4379_v11 = vpop.f32.mrb[9].mxu0  ;;  %v4435_v13 = vpop.f32.mrb[9].mxu1  ;;  %4445 = vmatprep.subr.msk.mxu0 %vm628_vm4, %v570_v10 }
 0x127   :  { %v331_v14 = vpop.f32.mrb[10].mxu0  ;;  %v573_v16 = vpop.f32.mrb[10].mxu1  ;;  %4446 = vmatpush3.msk.msra.mxu0 %vm628_vm4, %v570_v10  ;;  %v5280_v11 = vld [vmem:[%s6402_s3 + $0x48] sm:$0xff]   ;;  %v5282_v13 = vld [vmem:[%s6402_s3 + $0x50] sm:$0xff]  }
 0x128   :  { %v4380_v17 = vpop.f32.mrb[11].mxu0  ;;  %v4436_v18 = vpop.f32.mrb[11].mxu1  ;;  %5010 = vmatprep.subr.bf16.mxu0 %v5009_v49  ;;  %4448 = vmatmul.mubr.msk.f32.vlgmr.msra.gmra.mrb[12].mxu0 %vm615_vm2, %v5661_v12  ;;  %v5284_v14 = vld [vmem:[%s6402_s3 + $0x58] sm:$0xff]   ;;  %v5288_v16 = vld [vmem:[%s6402_s3 + $0x68] sm:$0xff]  }
 0x129   :  { %5012 = vmatpush3.bf16.msra.mxu0 %v5009_v49  ;;  %4450 = vmatprep.mubr.msk.f32.mxu0 %vm615_vm2, %v613_v15  ;;  %v3743_v49 = vadd.s32 4294967287, %v5647_v52  ;;  %v5286_v15 = vld [vmem:[%s6402_s3 + $0x60] sm:$0xff]   ;;  %v5290_v17 = vld [vmem:[%s6402_s3 + $0x70] sm:$0xff]  }
 0x12a   :  { %5014 = vmatprep.subr.bf16.mxu0 %v5013_v2  ;;  %v5291_v18 = vld [vmem:[%s6402_s3 + $0xf0] sm:$0xff]  }
 0x12b   :  { %v851_v50 = vmul.u32 2, %v3743_v49  ;;  %vm869_vm14 = vcmp.le.s32.totalorder %v3743_v49, 7  ;;  %v5306_v49 = vld [vmem:[%s6402_s3 + $0x30] sm:$0xff]  }
 0x12c   :  { %4451 = vmatmul.mubr.msk.f32.gmra.mrb[14].mxu0 %vm615_vm2, %v614_v19  ;;  %v5292_v19 = vld [vmem:[%s6402_s3 + $0x78] sm:$0xff]  }
 0x12d   :  { %5016 = vmatpush3.bf16.msra.mxu0 %v5013_v2  ;;  %4463 = vmatprep.mubr.msk.f32.mxu0 %vm615_vm2, %v5674_v20  ;;  %v854_v51 = vadd.s32 16, %v851_v50  ;;  %v5307_v50 = vld [vmem:[%s6402_s3 + $0xb0] sm:$0xff]  }
 0x12e   :  { %4461 = vmatprep.subr.msk.mxu0 %vm628_vm4, %v328_v9 }
 0x12f   :  { %v3746_v54 = vadd.s32 4294967295, %v854_v51 }
 0x131   :  { %4462 = vmatpush3.msk.msra.mxu0 %vm628_vm4, %v328_v9  ;;  %vm860_vm12 = vcmp.eq.s32.totalorder %v5637_v41, %v3746_v54  ;;  %v5278_v9 = vld [vmem:[%s6402_s3 + $0x40] sm:$0xff]  }
 0x132   :  { %4464 = vmatmul.mubr.msk.f32.vlgmr.msra.gmra.mrb[12].mxu0 %vm615_vm2, %v600_v21  ;;  %4525 = vmatprep.subr.bf16.mxu0 %v5279_v42  ;;  %v866_v5 = vsel %vm860_vm12, 1.0, %v5380_v0  ;;  %v5293_v21 = vld [vmem:[%s6402_s3 + $0xf8] sm:$0xff]  }
 0x133   :  { %4466 = vmatprep.mubr.msk.f32.mxu0 %vm615_vm2, %v601_v22  ;;  %4526 = vmatpush3.bf16.msra.mxu0 %v5279_v42  ;;  %v880_v7 = vpack.c.bf16 %v866_v5, %v866_v5  ;;  %v5294_v22 = vld [vmem:[%s6402_s3] sm:$0xff]   ;;  %v5300_v42 = vld [vmem:[%s6402_s3 + $0x18] sm:$0xff]  }
 0x134   :  { %4527 = vmatprep.subr.bf16.mxu0 %v5281_v44 }
 0x136   :  { %4467 = vmatmul.mubr.msk.f32.gmra.mrb[14].mxu0 %vm615_vm2, %v602_v23  ;;  %vm862_vm2 = vmand %vm844_vm13, %vm859_vm15  ;;  %vm872_vm15 = vcmp.eq.s32.totalorder %v5637_v41, %v854_v51  ;;  %v5295_v23 = vld [vmem:[%s6402_s3 + $0x80] sm:$0xff]   ;;  %v5308_v51 = vld [vmem:[%s6402_s3 + $0x38] sm:$0xff]  }
 0x137   :  { %v865_v35 = vsel %vm862_vm2, 1.0, %v5380_v0  ;;  %4528 = vmatpush3.bf16.msra.mxu0 %v5281_v44  ;;  %vm875_vm1 = vmand %vm869_vm14, %vm872_vm15  ;;  %v5301_v44 = vld [vmem:[%s6402_s3 + $0x98] sm:$0xff]   ;;  %vm1463_vm2 = vcmask 146432  }
 0x138   :  { %v879_v36 = vpack.c.bf16 %v865_v35, %v864_v34  ;;  %4529 = vmatprep.subr.bf16.mxu0 %v5283_v45  ;;  %v878_v8 = vsel %vm875_vm1, 1.0, %v5380_v0 }
 0x139   :  { %v882_v10 = vpack.c.bf16 %v878_v8, %v878_v8 }
 0x13a   :  { %4473 = vmatprep.mubr.msk.bf16.mxu1 %vm883_vm3, %v879_v36  ;;  %v5296_v36 = vld [vmem:[%s6402_s3 + $0x8] sm:$0xff]  }
 0x13b   :  { %4530 = vmatpush3.bf16.msra.mxu0 %v5283_v45  ;;  %v5302_v45 = vld [vmem:[%s6402_s3 + $0x20] sm:$0xff]  }
 0x13c   :  { %4531 = vmatprep.subr.bf16.mxu0 %v5285_v46 }
 0x13f   :  { %4532 = vmatpush3.bf16.msra.mxu0 %v5285_v46  ;;  %v5303_v46 = vld [vmem:[%s6402_s3 + $0xa0] sm:$0xff]  }
 0x140   :  { %4533 = vmatprep.subr.bf16.mxu0 %v5287_v47 }
 0x143   :  { %4534 = vmatpush3.bf16.msra.mxu0 %v5287_v47  ;;  %v5304_v47 = vld [vmem:[%s6402_s3 + $0x28] sm:$0xff]  }
 0x144   :  { %4535 = vmatprep.subr.bf16.mxu0 %v5289_v48 }
 0x147   :  { %4536 = vmatpush3.bf16.msra.mxu0 %v5289_v48  ;;  %v5305_v48 = vld [vmem:[%s6402_s3 + $0xa8] sm:$0xff]  }
 0x148   :  { %4537 = vmatprep.subr.bf16.mxu0 %v5291_v18 }
 0x14b   :  { %4538 = vmatpush3.bf16.msra.mxu0 %v5291_v18  ;;  %v1658_v18 = vld [vmem:[%s6403_s6 + $0x50] sm:$0xff] }
 0x14c   :  { %4539 = vmatprep.subr.bf16.mxu0 %v5293_v21 }
 0x14f   :  { %4540 = vmatpush3.bf16.msra.mxu0 %v5293_v21 }
 0x150   :  { %4545 = vmatprep.subr.bf16.mxu0 %v5295_v23 }
 0x205   :  { %v4465_v53 = vpop.f32.mrb[12].mxu0 }
 0x206   :  { %vm818_vm9 = vcmp.ge.f32.partialorder %v4465_v53, 0.0  ;;  %v822_v56 = vmul.f32 0.2, %v4465_v53  ;;  %v798_v57 = vpop.f32.mrb[13].mxu0 }
 0x207   :  { %vm817_vm10 = vcmp.ge.f32.partialorder %v798_v57, 0.0  ;;  %v821_v58 = vmul.f32 0.2, %v798_v57 }
 0x208   :  { %v826_v59 = vsel %vm818_vm9, %v4465_v53, %v822_v56  ;;  %v5309_v53 = vld [vmem:[%s6402_s3 + $0xb8] sm:$0xff]   ;;  %v5383_v56 = vmov 0.0|0.0  }
 0x209   :  { %v825_v60 = vsel %vm817_vm10, %v798_v57, %v821_v58  ;;  %v4468_v61 = vpop.f32.mrb[14].mxu0  ;;  %v1648_v57 = vld [vmem:[%s6403_s6] sm:$0xff]  ;;  %v1649_v58 = vld [vmem:[%s6403_s6 + $0x8] sm:$0xff] }
 0x20a   :  { %v829_v62 = vpack.c.bf16 %v826_v59, %v825_v60  ;;  %vm820_vm11 = vcmp.ge.f32.partialorder %v4468_v61, 0.0  ;;  %v824_v1 = vmul.f32 0.2, %v4468_v61  ;;  %v808_v2 = vpop.f32.mrb[15].mxu0  ;;  %v1650_v59 = vld [vmem:[%s6403_s6 + $0x10] sm:$0xff]  ;;  %v5026_v60 = vpack.c.bf16 %v1649_v58, %v1648_v57 }
 0x20b   :  { %vm819_vm13 = vcmp.ge.f32.partialorder %v808_v2, 0.0  ;;  %v823_v52 = vmul.f32 0.2, %v808_v2 }
 0x20c   :  { %v828_v3 = vsel %vm820_vm11, %v4468_v61, %v824_v1  ;;  %4469 = vmatprep.subr.bf16.mxu1 %v829_v62  ;;  %v1653_v1 = vld [vmem:[%s6403_s6 + $0x28] sm:$0xff] }
 0x20d   :  { %v827_v4 = vsel %vm819_vm13, %v808_v2, %v823_v52  ;;  %4470 = vmatpush3.bf16.msra.mxu1 %v829_v62  ;;  %v1654_v52 = vld [vmem:[%s6403_s6 + $0x30] sm:$0xff] }
 0x20e   :  { %v830_v6 = vpack.c.bf16 %v828_v3, %v827_v4  ;;  %v1655_v3 = vld [vmem:[%s6403_s6 + $0x38] sm:$0xff] }
 0x20f   :  { %v5035_v4 = vpack.c.bf16 %v1655_v3, %v1654_v52  ;;  %v3837_v52 = vadd.s32 4294967291, %v5650_v55 }
 0x210   :  { %4471 = vmatprep.subr.bf16.mxu1 %v830_v6 }
 0x211   :  { %4472 = vmatpush3.bf16.msra.mxu1 %v830_v6  ;;  %vm1865_vm7 = vcmp.le.s32.totalorder %v3837_v52, 3 }
 0x212   :  { %4477 = vmatprep.subr.bf16.mxu1 %v829_v62 }
 0x214   :  { %4474 = vmatmul.mubr.msk.bf16.vlgmr.msra.gmra.mrb[12].mxu1 %vm883_vm3, %v880_v7 }
 0x215   :  { %4478 = vmatpush3.bf16.msra.mxu1 %v829_v62  ;;  %4481 = vmatprep.mubr.msk.bf16.mxu1 %vm883_vm3, %v881_v39  ;;  %v5299_v39 = vld [vmem:[%s6402_s3 + $0x90] sm:$0xff]   ;;  %v1652_v62 = vld [vmem:[%s6403_s6 + $0x20] sm:$0xff] }
 0x216   :  { %4479 = vmatprep.subr.bf16.mxu1 %v830_v6  ;;  %v5032_v2 = vpack.c.bf16 %v1653_v1, %v1652_v62 }
 0x219   :  { %4480 = vmatpush3.bf16.msra.mxu1 %v830_v6 }
 0x21a   :  { %4485 = vmatprep.subr.bf16.mxu1 %v5278_v9 }
 0x21c   :  { %4482 = vmatmul.mubr.msk.bf16.vlgmr.msra.gmra.mrb[16].mxu1 %vm883_vm3, %v882_v10 }
 0x21d   :  { %4486 = vmatpush3.bf16.msra.mxu1 %v5278_v9 }
 0x21e   :  { %4487 = vmatprep.subr.bf16.mxu1 %v5280_v11 }
 0x221   :  { %4488 = vmatpush3.bf16.msra.mxu1 %v5280_v11  ;;  %v1458_v11 = vadd.s32 1, %v5655_v63  ;;  %v1656_v63 = vld [vmem:[%s6403_s6 + $0x40] sm:$0xff] }
 0x222   :  { %4489 = vmatprep.subr.bf16.mxu1 %v5282_v13 }
 0x223   :  { %vm1460_vm3 = vcmp.eq.s32.totalorder %v5637_v41, %v1458_v11 }
 0x225   :  { %4490 = vmatpush3.bf16.msra.mxu1 %v5282_v13 }
 0x226   :  { %4491 = vmatprep.subr.bf16.mxu1 %v5284_v14 }
 0x229   :  { %4492 = vmatpush3.bf16.msra.mxu1 %v5284_v14 }
 0x22a   :  { %4493 = vmatprep.subr.bf16.mxu1 %v5286_v15 }
 0x22d   :  { %4494 = vmatpush3.bf16.msra.mxu1 %v5286_v15 }
 0x22e   :  { %4495 = vmatprep.subr.bf16.mxu1 %v5288_v16 }
 0x231   :  { %4496 = vmatpush3.bf16.msra.mxu1 %v5288_v16 }
 0x232   :  { %4497 = vmatprep.subr.bf16.mxu1 %v5290_v17 }
 0x235   :  { %4498 = vmatpush3.bf16.msra.mxu1 %v5290_v17  ;;  %v1462_v17 = vsel %vm1460_vm3, 1.0, %v5380_v0  ;;  %vm1874_vm3 = vcmask 130048  }
 0x236   :  { %4499 = vmatprep.subr.bf16.mxu1 %v5292_v19 }
 0x239   :  { %4500 = vmatpush3.bf16.msra.mxu1 %v5292_v19  ;;  %v1659_v19 = vld [vmem:[%s6403_s6 + $0x58] sm:$0xff] }
 0x23a   :  { %4505 = vmatprep.subr.bf16.mxu1 %v5294_v22  ;;  %v5041_v21 = vpack.c.bf16 %v1659_v19, %v1658_v18 }
 0x2e7   :  { %v4475_v25 = vpop.f32.mrb[12].mxu1 }
 0x2e8   :  { %v924_v26 = vpop.f32.mrb[13].mxu1  ;;  %v939_v54 = vpack.c.bf16 %v4475_v25, %v4475_v25 }
 0x2e9   :  { %v4476_v27 = vpop.f32.mrb[14].mxu1 }
 0x2ea   :  { %v927_v28 = vpop.f32.mrb[15].mxu1  ;;  %v1663_v27 = vld [vmem:[%s6403_s6 + $0x78] sm:$0xff] }
 0x2eb   :  { %v938_v29 = vpack.c.bf16 %v927_v28, %v924_v26  ;;  %v1662_v26 = vld [vmem:[%s6403_s6 + $0x70] sm:$0xff] }
 0x2ec   :  { %v5047_v28 = vpack.c.bf16 %v1663_v27, %v1662_v26 }
 0x2ef   :  { %v4483_v30 = vpop.f32.mrb[16].mxu1 }
 0x2f0   :  { %v980_v31 = vpop.f32.mrb[17].mxu1  ;;  %v995_v35 = vpack.c.bf16 %v4483_v30, %v4483_v30 }
 0x2f1   :  { %v4484_v32 = vpop.f32.mrb[18].mxu1 }
 0x2f2   :  { %v983_v33 = vpop.f32.mrb[19].mxu1 }
 0x2f3   :  { %v994_v34 = vpack.c.bf16 %v983_v33, %v980_v31 }
 0x2f5   :  { %4501 = vmatprep.mubr.bf16.mxu1 %v994_v34  ;;  %4541 = vmatprep.mubr.bf16.mxu0 %v994_v34 }
 0x2f6   :  { %4502 = vmatmul.mubr.bf16.vlgmr.msra.gmra.mrb[20].mxu1 %v995_v35  ;;  %4542 = vmatmul.mubr.bf16.vlgmr.msra.gmra.mrb[16].mxu0 %v995_v35 }
 0x2f7   :  { %4506 = vmatpush3.bf16.msra.mxu1 %v5294_v22  ;;  %4546 = vmatpush3.bf16.msra.mxu0 %v5295_v23  ;;  %v1660_v22 = vld [vmem:[%s6403_s6 + $0x60] sm:$0xff]  ;;  %v1661_v23 = vld [vmem:[%s6403_s6 + $0x68] sm:$0xff] }
 0x2f8   :  { %4521 = vmatprep.mubr.bf16.mxu1 %v938_v29  ;;  %4561 = vmatprep.mubr.bf16.mxu0 %v938_v29  ;;  %v5044_v25 = vpack.c.bf16 %v1661_v23, %v1660_v22 }
 0x2f9   :  { %4507 = vmatprep.subr.bf16.mxu1 %v5296_v36  ;;  %4547 = vmatprep.subr.bf16.mxu0 %v5297_v37 }
 0x2fb   :  { %4508 = vmatpush3.bf16.msra.mxu1 %v5296_v36  ;;  %4548 = vmatpush3.bf16.msra.mxu0 %v5297_v37 }
 0x2fc   :  { %4509 = vmatprep.subr.bf16.mxu1 %v5298_v38  ;;  %4549 = vmatprep.subr.bf16.mxu0 %v5299_v39 }
 0x2ff   :  { %4510 = vmatpush3.bf16.msra.mxu1 %v5298_v38  ;;  %4550 = vmatpush3.bf16.msra.mxu0 %v5299_v39 }
 0x300   :  { %4511 = vmatprep.subr.bf16.mxu1 %v5300_v42  ;;  %4551 = vmatprep.subr.bf16.mxu0 %v5301_v44 }
 0x303   :  { %4512 = vmatpush3.bf16.msra.mxu1 %v5300_v42  ;;  %4552 = vmatpush3.bf16.msra.mxu0 %v5301_v44 }
 0x304   :  { %4513 = vmatprep.subr.bf16.mxu1 %v5302_v45  ;;  %4553 = vmatprep.subr.bf16.mxu0 %v5303_v46 }
 0x307   :  { %4514 = vmatpush3.bf16.msra.mxu1 %v5302_v45  ;;  %4554 = vmatpush3.bf16.msra.mxu0 %v5303_v46 }
 0x308   :  { %4515 = vmatprep.subr.bf16.mxu1 %v5304_v47  ;;  %4555 = vmatprep.subr.bf16.mxu0 %v5305_v48 }
 0x30b   :  { %4516 = vmatpush3.bf16.msra.mxu1 %v5304_v47  ;;  %4556 = vmatpush3.bf16.msra.mxu0 %v5305_v48 }
 0x30c   :  { %4517 = vmatprep.subr.bf16.mxu1 %v5306_v49  ;;  %4557 = vmatprep.subr.bf16.mxu0 %v5307_v50 }
 0x30f   :  { %4518 = vmatpush3.bf16.msra.mxu1 %v5306_v49  ;;  %4558 = vmatpush3.bf16.msra.mxu0 %v5307_v50 }
 0x310   :  { %4519 = vmatprep.subr.bf16.mxu1 %v5308_v51  ;;  %4559 = vmatprep.subr.bf16.mxu0 %v5309_v53 }
 0x313   :  { %4520 = vmatpush3.bf16.msra.mxu1 %v5308_v51  ;;  %4560 = vmatpush3.bf16.msra.mxu0 %v5309_v53 }
 0x314   :  { %5025 = vmatprep.subr.bf16.mxu0 %v5383_v56 }
 0x316   :  { %4522 = vmatmul.mubr.bf16.vlgmr.msra.gmra.mrb[20].mxu1 %v939_v54  ;;  %4562 = vmatmul.mubr.bf16.vlgmr.msra.gmra.mrb[16].mxu0 %v939_v54 }
 0x317   :  { %4615 = vmatprep.mubr.msk.f32.mxu0 %vm5381_vm0, %v5380_v0  ;;  %4571 = vmatprep.mubr.msk.f32.mxu1 %vm1463_vm2, %v5642_v43  ;;  %v1651_v43 = vld [vmem:[%s6403_s6 + $0x18] sm:$0xff] }
 0x318   :  { %5027 = vmatpush3.bf16.msra.mxu0 %v5026_v60  ;;  %v5029_v61 = vpack.c.bf16 %v1651_v43, %v1650_v59  ;;  %v1842_v43 = vsel %vm1840_vm5, 1, %v5382_v24  ;;  %vm2388_vm5 = vcmp.ge.s32.totalorder %v5635_v40, 4 }
 0x319   :  { %5028 = vmatprep.subr.bf16.mxu0 %v5383_v56  ;;  %v1844_v1 = vmul.u32 5, %v1842_v43  ;;  %v1850_v3 = vmul.u32 8, %v1842_v43  ;;  %v5327_v43 = vld [vmem:[%s6404_s4 + $0x80] sm:$0xff]  }
 0x31c   :  { %5030 = vmatpush3.bf16.msra.mxu0 %v5029_v61 }
 0x31d   :  { %5031 = vmatprep.subr.bf16.mxu0 %v5383_v56 }
 0x320   :  { %5033 = vmatpush3.bf16.msra.mxu0 %v5032_v2 }
 0x321   :  { %5034 = vmatprep.subr.bf16.mxu0 %v5383_v56 }
 0x324   :  { %5036 = vmatpush3.bf16.msra.mxu0 %v5035_v4 }
 0x325   :  { %5037 = vmatprep.subr.bf16.mxu0 %v5383_v56 }
 0x3e9   :  { %v4523_v5 = vpop.f32.mrb[20].mxu1  ;;  %v4563_v6 = vpop.f32.mrb[16].mxu0 }
 0x3ea   :  { %v1207_v7 = vpop.f32.mrb[21].mxu1  ;;  %v1433_v8 = vpop.f32.mrb[17].mxu0 }
 0x3eb   :  { %v4524_v9 = vpop.f32.mrb[22].mxu1  ;;  %v4564_v10 = vpop.f32.mrb[18].mxu0 }
 0x3ec   :  { %v1210_v13 = vpop.f32.mrb[23].mxu1  ;;  %v1436_v14 = vpop.f32.mrb[19].mxu0 }
 0x3ed   :  { %v5021_v15 = vpack.c.bf16 %v1210_v13, %v1207_v7  ;;  %v5017_v16 = vpack.c.bf16 %v1436_v14, %v1433_v8  ;;  %v5905_v7 = vsub.s32 0, %v5635_v40  ;;  %v1814_v13 = vld [vmem:[%s6406_s8] sm:$0x1] }
 0x3ef   :  { %5018 = vmatprep.subr.bf16.mxu1 %v5017_v16 }
 0x3f0   :  { %5020 = vmatpush3.bf16.msra.mxu1 %v5017_v16 }
 0x3f1   :  { %4569 = vmatprep.subr.msk.mxu1 %vm628_vm4, %v4563_v6 }
 0x3f4   :  { %4570 = vmatpush3.msk.msra.mxu1 %vm628_vm4, %v4563_v6  ;;  %v1810_v6 = vld [vmem:[%s6405_s7] sm:$0x1] }
 0x3f5   :  { %4572 = vmatmul.mubr.msk.f32.vlgmr.msra.gmra.mrb[24].mxu1 %vm1463_vm2, %v1462_v17  ;;  %5022 = vmatprep.subr.bf16.mxu1 %v5021_v15 }
 0x3f6   :  { %5024 = vmatpush3.bf16.msra.mxu1 %v5021_v15  ;;  %4580 = vmatprep.mubr.msk.f32.mxu1 %vm1463_vm2, %v5674_v20 }
 0x3f7   :  { %4578 = vmatprep.subr.msk.mxu1 %vm628_vm4, %v4523_v5 }
 0x3fa   :  { %4579 = vmatpush3.msk.msra.mxu1 %vm628_vm4, %v4523_v5  ;;  %v1853_v5 = vmul.u32 2, %v3837_v52 }
 0x3fb   :  { %5049 = vmatprep.subr.bf16.mxu1 %v5383_v56 }
 0x3fc   :  { %v1855_v10 = vadd.s32 8, %v1853_v5  ;;  %v5330_v5 = vld [vmem:[%s6404_s4 + $0x10] sm:$0xff]  }
 0x3fd   :  { %4581 = vmatmul.mubr.msk.f32.vlgmr.msra.gmra.mrb[24].mxu1 %vm1463_vm2, %v5661_v12  ;;  %v1657_v12 = vld [vmem:[%s6403_s6 + $0x48] sm:$0xff] }
 0x3fe   :  { %5051 = vmatpush3.bf16.msra.mxu1 %v5026_v60  ;;  %4650 = vmatprep.mubr.msk.f32.mxu1 %vm5381_vm0, %v5380_v0  ;;  %v5038_v20 = vpack.c.bf16 %v1657_v12, %v1656_v63  ;;  %vm1867_vm9 = vcmp.eq.s32.totalorder %v5637_v41, %v1855_v10  ;;  %v3839_v12 = vadd.s32 4294967295, %v1855_v10  ;;  %v5334_v10 = vld [vmem:[%s6404_s4 + $0x20] sm:$0xff]  }
 0x3ff   :  { %5052 = vmatprep.subr.bf16.mxu1 %v5383_v56  ;;  %vm1869_vm13 = vmand %vm1865_vm7, %vm1867_vm9  ;;  %vm2396_vm9 = vcmask 80896  }
 0x400   :  { %5039 = vmatpush3.bf16.msra.mxu0 %v5038_v20  ;;  %vm1859_vm14 = vcmp.eq.s32.totalorder %v5637_v41, %v3839_v12  ;;  %v2563_v12 = vld [vmem:[%s6407_s9 + $0x8] sm:$0xff] }
 0x401   :  { %5040 = vmatprep.subr.bf16.mxu0 %v5383_v56  ;;  %v1863_v27 = vsel %vm1859_vm14, 1.0, %v5380_v0 }
 0x402   :  { %5054 = vmatpush3.bf16.msra.mxu1 %v5029_v61 }
 0x403   :  { %5055 = vmatprep.subr.bf16.mxu1 %v5383_v56 }
 0x404   :  { %5042 = vmatpush3.bf16.msra.mxu0 %v5041_v21 }
 0x405   :  { %5043 = vmatprep.subr.bf16.mxu0 %v5383_v56 }
 0x406   :  { %5057 = vmatpush3.bf16.msra.mxu1 %v5032_v2  ;;  %v1846_v2 = vsub.s32 %v5635_v40, %v1844_v1 }
 0x407   :  { %5058 = vmatprep.subr.bf16.mxu1 %v5383_v56 }
 0x408   :  { %5045 = vmatpush3.bf16.msra.mxu0 %v5044_v25  ;;  %vm1864_vm6 = vcmp.le.s32.totalorder %v1846_v2, 3  ;;  %vm1848_vm10 = vcmp.ge.s32.totalorder %v1846_v2, 1 }
 0x409   :  { %5046 = vmatprep.subr.bf16.mxu0 %v5383_v56 }
 0x40a   :  { %5060 = vmatpush3.bf16.msra.mxu1 %v5035_v4  ;;  %v1852_v4 = vmul.u32 2, %v1846_v2 }
 0x40b   :  { %5061 = vmatprep.subr.bf16.mxu1 %v5383_v56 }
 0x40c   :  { %5048 = vmatpush3.bf16.msra.mxu0 %v5047_v28  ;;  %v1854_v9 = vadd.s32 %v1852_v4, %v1850_v3  ;;  %v5328_v3 = vld [vmem:[%s6404_s4 + $0x8] sm:$0xff]  }
 0x40d   :  { %4659 = vmatprep.subr.bf16.mxu0 %v5380_v0  ;;  %v5329_v4 = vld [vmem:[%s6404_s4 + $0x88] sm:$0xff]  }
 0x40e   :  { %5063 = vmatpush3.bf16.msra.mxu1 %v5038_v20  ;;  %v3838_v14 = vadd.s32 4294967295, %v1854_v9  ;;  %vm1866_vm8 = vcmp.eq.s32.totalorder %v5637_v41, %v1854_v9  ;;  %v5333_v9 = vld [vmem:[%s6404_s4 + $0x98] sm:$0xff]  }
 0x40f   :  { %5064 = vmatprep.subr.bf16.mxu1 %v5383_v56  ;;  %vm1868_vm12 = vmand %vm1864_vm6, %vm1866_vm8  ;;  %vm5384_vm6 = vmmov 1  }
 0x410   :  { %vm1858_vm11 = vcmp.eq.s32.totalorder %v5637_v41, %v3838_v14  ;;  %v1870_v23 = vsel %vm1868_vm12, 1.0, %v5380_v0  ;;  %v5337_v14 = vld [vmem:[%s6404_s4 + $0xa8] sm:$0xff]   ;;  %vm5075_vm7 = vmpackc.low %vm628_vm4, %vm5384_vm6  ;;  %vm2749_vm4 = vcmp.ge.s32.totalorder %v5635_v40, 3  ;;  %vm3279_vm6 = vcmp.ge.s32.totalorder %v5635_v40, 2 }
 0x411   :  { %vm1860_vm15 = vmand %vm1848_vm10, %vm1858_vm11 }
 0x412   :  { %5066 = vmatpush3.bf16.msra.mxu1 %v5041_v21  ;;  %v1862_v26 = vsel %vm1860_vm15, 1.0, %v5380_v0  ;;  %vm2771_vm15 = vcmask 1043456  }
 0x413   :  { %5067 = vmatprep.subr.bf16.mxu1 %v5383_v56 }
 0x416   :  { %5069 = vmatpush3.bf16.msra.mxu1 %v5044_v25  ;;  %v1871_v25 = vsel %vm1869_vm13, 1.0, %v5380_v0 }
 0x417   :  { %5070 = vmatprep.subr.bf16.mxu1 %v5383_v56 }
 0x41a   :  { %5072 = vmatpush3.bf16.msra.mxu1 %v5047_v28 }
 0x41b   :  { %4653 = vmatprep.subr.bf16.mxu1 %v5380_v0 }
 0x4d0   :  { %v4582_v29 = vpop.f32.mrb[24].mxu1 }
 0x4d1   :  { %v1640_v30 = vmul.f32 %v4582_v29, %v4582_v29  ;;  %v1623_v31 = vpop.f32.mrb[25].mxu1 }
 0x4d2   :  { %v1632_v32 = vadd.f32 %v4582_v29, %v1623_v31  ;;  %v1639_v33 = vmul.f32 %v1623_v31, %v1623_v31 }
 0x4d4   :  { %v1633_v34 = vrot.slane %v1632_v32, 4  ;;  %v1641_v35 = vadd.f32 %v1640_v30, %v1639_v33  ;;  %v5310_v33 = vld [vmem:[%s6404_s4 + $0x40] sm:$0xff]  }
 0x4d6   :  { %v1634_v36 = vadd.f32 %v1633_v34, %v1632_v32  ;;  %v1642_v37 = vrot.slane %v1641_v35, 4  ;;  %v1872_v32 = vpack.c.bf16 %v1863_v27, %v1862_v26  ;;  %v5311_v34 = vld [vmem:[%s6404_s4 + $0xc0] sm:$0xff]   ;;  %v2568_v26 = vld [vmem:[%s6407_s9 + $0x30] sm:$0xff]  ;;  %v2569_v27 = vld [vmem:[%s6407_s9 + $0x38] sm:$0xff] }
 0x4d8   :  { %v1635_v38 = vrot.slane %v1634_v36, 2  ;;  %v1643_v39 = vadd.f32 %v1642_v37, %v1641_v35  ;;  %v5312_v35 = vld [vmem:[%s6404_s4 + $0x48] sm:$0xff]   ;;  %v5314_v37 = vld [vmem:[%s6404_s4 + $0x50] sm:$0xff]  }
 0x4da   :  { %v1636_v42 = vadd.f32 %v1635_v38, %v1634_v36  ;;  %v1644_v44 = vrot.slane %v1643_v39, 2  ;;  %v5313_v36 = vld [vmem:[%s6404_s4 + $0xc8] sm:$0xff]   ;;  %v5315_v38 = vld [vmem:[%s6404_s4 + $0xd0] sm:$0xff]  }
 0x4dc   :  { %v1637_v45 = vrot.slane %v1636_v42, 1  ;;  %v1645_v46 = vadd.f32 %v1644_v44, %v1643_v39  ;;  %v5316_v39 = vld [vmem:[%s6404_s4 + $0x58] sm:$0xff]   ;;  %v5318_v44 = vld [vmem:[%s6404_s4 + $0x60] sm:$0xff]  }
 0x4de   :  { %v1638_v47 = vadd.f32 %v1637_v45, %v1636_v42  ;;  %v1646_v48 = vrot.slane %v1645_v46, 1  ;;  %v5317_v42 = vld [vmem:[%s6404_s4 + $0xd8] sm:$0xff]   ;;  %v5319_v45 = vld [vmem:[%s6404_s4 + $0xe0] sm:$0xff]  }
 0x4e0   :  { %4616 = vmatmul.mubr.f32.vlgmr.msra.gmra.mrb[20].mxu0 %v1638_v47  ;;  %v1647_v49 = vadd.f32 %v1646_v48, %v1645_v46  ;;  %v5320_v46 = vld [vmem:[%s6404_s4 + $0x68] sm:$0xff]   ;;  %v5322_v48 = vld [vmem:[%s6404_s4 + $0x70] sm:$0xff]  }
 0x4e1   :  { %4661 = vmatprep.mubr.msk.bf16.mxu0 %vm5381_vm0, %v5380_v0  ;;  %v5321_v47 = vld [vmem:[%s6404_s4 + $0xe8] sm:$0xff]  }
 0x4e2   :  { %4651 = vmatmul.mubr.f32.vlgmr.msra.gmra.mrb[26].mxu1 %v1647_v49  ;;  %v5323_v49 = vld [vmem:[%s6404_s4 + $0xf0] sm:$0xff]  }
 0x4e3   :  { %4655 = vmatprep.mubr.msk.bf16.mxu1 %vm5381_vm0, %v5380_v0 }
 0x5b3   :  { %v1730_v50 = vpop.f32.mrb[20].mxu0 }
 0x5b4   :  { %v1735_v51 = vmul.f32 0.0078125, %v1730_v50  ;;  %v4617_v53 = vpop.f32.mrb[21].mxu0  ;;  %v5324_v50 = vld [vmem:[%s6404_s4 + $0x78] sm:$0xff]  }
 0x5b5   :  { %v1802_v54 = vpop.f32.mrb[26].mxu1 }
 0x5b6   :  { %v1807_v57 = vmul.f32 %v1735_v51, %v1735_v51  ;;  %v1806_v58 = vmul.f32 0.0078125, %v1802_v54  ;;  %v4652_v59 = vpop.f32.mrb[27].mxu1 }
 0x5b8   :  { %v1808_v60 = vsub.f32 %v1806_v58, %v1807_v57 }
 0x5ba   :  { %v1809_v61 = vmax.f32 %v1808_v60, 0.0  ;;  %v5326_v60 = vld [vmem:[%s6404_s4] sm:$0xff]  }
 0x5bc   :  { %v1811_v62 = vadd.f32 1e-05, %v1809_v61 }
 0x5be   :  { %5374 = vrsqrt.f32 %v1811_v62 }
 0x5c8   :  { %v5375_v8 = vpop.eup %5374 }
 0x5c9   :  { %v1813_v11 = vmul.f32 %v5375_v8, %v1810_v6  ;;  %v5331_v6 = vld [vmem:[%s6404_s4 + $0x90] sm:$0xff]   ;;  %v5332_v8 = vld [vmem:[%s6404_s4 + $0x18] sm:$0xff]  }
 0x5cb   :  { %v1815_v55 = vmul.f32 %v1813_v11, %v1735_v51  ;;  %v1821_v15 = vrot.slane %v1813_v11, %v5905_v7  ;;  %v5325_v51 = vld [vmem:[%s6404_s4 + $0xf8] sm:$0xff]   ;;  %v5335_v11 = vld [vmem:[%s6404_s4 + $0xa0] sm:$0xff]  }
 0x5cd   :  { %v1816_v16 = vsub.f32 %v1814_v13, %v1815_v55  ;;  %v1823_v17 = vmul.f32 %v1821_v15, %v1623_v31  ;;  %v1824_v63 = vmul.f32 %v4582_v29, %v1821_v15  ;;  %v1873_v31 = vpack.c.bf16 %v1871_v25, %v1870_v23  ;;  %v5336_v13 = vld [vmem:[%s6404_s4 + $0x28] sm:$0xff]   ;;  %v5338_v55 = vld [vmem:[%s6404_s4 + $0x30] sm:$0xff]  }
 0x5ce   :  { %v5339_v15 = vld [vmem:[%s6404_s4 + $0xb0] sm:$0xff]   ;;  %v2567_v23 = vld [vmem:[%s6407_s9 + $0x28] sm:$0xff] }
 0x5cf   :  { %v1829_v20 = vrot.slane %v1816_v16, %v5905_v7  ;;  %v5340_v16 = vld [vmem:[%s6404_s4 + $0x38] sm:$0xff]  }
 0x5d1   :  { %v1831_v18 = vadd.f32 %v1829_v20, %v1823_v17  ;;  %v1832_v19 = vadd.f32 %v1829_v20, %v1824_v63  ;;  %v5341_v17 = vld [vmem:[%s6404_s4 + $0xb8] sm:$0xff]   ;;  %v2562_v63 = vld [vmem:[%s6407_s9] sm:$0xff]  ;;  %v2564_v20 = vld [vmem:[%s6407_s9 + $0x10] sm:$0xff] }
 0x5d3   :  { %vm1833_vm1 = vcmp.ge.f32.partialorder %v1831_v18, 0.0  ;;  %vm1834_vm2 = vcmp.ge.f32.partialorder %v1832_v19, 0.0  ;;  %v1835_v21 = vmul.f32 0.2, %v1831_v18  ;;  %v1836_v22 = vmul.f32 0.2, %v1832_v19 }
 0x5d5   :  { %v1837_v28 = vsel %vm1833_vm1, %v1831_v18, %v1835_v21  ;;  %v1838_v29 = vsel %vm1834_vm2, %v1832_v19, %v1836_v22  ;;  %v5082_v18 = vpack.c.bf16 %v2563_v12, %v2562_v63  ;;  %v2565_v19 = vld [vmem:[%s6407_s9 + $0x18] sm:$0xff]  ;;  %v2566_v22 = vld [vmem:[%s6407_s9 + $0x20] sm:$0xff]  ;;  %v5352_v12 = vld [vmem:[%s6408_s5 + $0x68] sm:$0xff]  }
 0x5d6   :  { %v1839_v30 = vpack.c.bf16 %v1838_v29, %v1837_v28  ;;  %v5085_v21 = vpack.c.bf16 %v2565_v19, %v2564_v20  ;;  %v5088_v25 = vpack.c.bf16 %v2567_v23, %v2566_v22  ;;  %v5091_v28 = vpack.c.bf16 %v2569_v27, %v2568_v26  ;;  %v2570_v29 = vld [vmem:[%s6407_s9 + $0x40] sm:$0xff]  ;;  %v5354_v20 = vld [vmem:[%s6408_s5 + $0x70] sm:$0xff]  }
 0x5d7   :  { %v5350_v63 = vld [vmem:[%s6408_s5 + $0x60] sm:$0xff]  }
 0x5d8   :  { %4654 = vmatpush3.bf16.msra.mxu1 %v1839_v30  ;;  %4660 = vmatpush3.bf16.msra.mxu0 %v1839_v30  ;;  %v2571_v30 = vld [vmem:[%s6407_s9 + $0x48] sm:$0xff] }
 0x5d9   :  { %4665 = vmatprep.subr.bf16.mxu0 %v5380_v0  ;;  %4705 = vmatprep.subr.bf16.mxu1 %v5380_v0 }
 0x5db   :  { %4662 = vmatmul.mubr.msk.bf16.vlgmr.msra.gmra.mrb[24].mxu0 %vm1874_vm3, %v1873_v31  ;;  %4656 = vmatmul.mubr.msk.bf16.vlgmr.msra.gmra.mrb[28].mxu1 %vm1874_vm3, %v1872_v32  ;;  %v5094_v31 = vpack.c.bf16 %v2571_v30, %v2570_v29  ;;  %v2389_v32 = vsel %vm2388_vm5, 1, %v5382_v24  ;;  %vm2767_vm3 = vcmask 64512  }
 0x5dc   :  { %4666 = vmatpush3.bf16.msra.mxu0 %v5310_v33  ;;  %4706 = vmatpush3.bf16.msra.mxu1 %v5311_v34  ;;  %v2390_v33 = vadd.s32 %v2389_v32, %v5635_v40 }
 0x5dd   :  { %4667 = vmatprep.subr.bf16.mxu0 %v5380_v0  ;;  %4707 = vmatprep.subr.bf16.mxu1 %v5380_v0 }
 0x5de   :  { %4681 = vmatprep.mubr.msk.bf16.mxu0 %vm5381_vm0, %v5380_v0  ;;  %4721 = vmatprep.mubr.msk.bf16.mxu1 %vm5381_vm0, %v5380_v0  ;;  %v2393_v34 = vadd.s32 1, %v2390_v33  ;;  %vm2391_vm10 = vcmp.eq.s32.totalorder %v5637_v41, %v2390_v33 }
 0x5e0   :  { %4668 = vmatpush3.bf16.msra.mxu0 %v5312_v35  ;;  %4708 = vmatpush3.bf16.msra.mxu1 %v5313_v36  ;;  %vm2394_vm8 = vcmp.eq.s32.totalorder %v5637_v41, %v2393_v34 }
 0x5e1   :  { %4669 = vmatprep.subr.bf16.mxu0 %v5380_v0  ;;  %4709 = vmatprep.subr.bf16.mxu1 %v5380_v0 }
 0x5e4   :  { %4670 = vmatpush3.bf16.msra.mxu0 %v5314_v37  ;;  %4710 = vmatpush3.bf16.msra.mxu1 %v5315_v38 }
 0x5e5   :  { %4671 = vmatprep.subr.bf16.mxu0 %v5380_v0  ;;  %4711 = vmatprep.subr.bf16.mxu1 %v5380_v0 }
 0x5e8   :  { %4672 = vmatpush3.bf16.msra.mxu0 %v5316_v39  ;;  %4712 = vmatpush3.bf16.msra.mxu1 %v5317_v42 }
 0x5e9   :  { %4673 = vmatprep.subr.bf16.mxu0 %v5380_v0  ;;  %4713 = vmatprep.subr.bf16.mxu1 %v5380_v0 }
 0x5ec   :  { %4674 = vmatpush3.bf16.msra.mxu0 %v5318_v44  ;;  %4714 = vmatpush3.bf16.msra.mxu1 %v5319_v45 }
 0x5ed   :  { %4675 = vmatprep.subr.bf16.mxu0 %v5380_v0  ;;  %4715 = vmatprep.subr.bf16.mxu1 %v5380_v0 }
 0x5f0   :  { %4676 = vmatpush3.bf16.msra.mxu0 %v5320_v46  ;;  %4716 = vmatpush3.bf16.msra.mxu1 %v5321_v47 }
 0x5f1   :  { %4677 = vmatprep.subr.bf16.mxu0 %v5380_v0  ;;  %4717 = vmatprep.subr.bf16.mxu1 %v5380_v0 }
 0x5f4   :  { %4678 = vmatpush3.bf16.msra.mxu0 %v5322_v48  ;;  %4718 = vmatpush3.bf16.msra.mxu1 %v5323_v49  ;;  %v2395_v48 = vsel %vm2394_vm8, 1.0, %v5380_v0  ;;  %v2392_v49 = vsel %vm2391_vm10, 1.0, %v5380_v0  ;;  %vm3291_vm8 = vcmask 1045504  }
 0x5f5   :  { %4679 = vmatprep.subr.bf16.mxu0 %v5380_v0  ;;  %4719 = vmatprep.subr.bf16.mxu1 %v5380_v0 }
 0x5f8   :  { %4680 = vmatpush3.bf16.msra.mxu0 %v5324_v50  ;;  %4720 = vmatpush3.bf16.msra.mxu1 %v5325_v51  ;;  %v2572_v50 = vld [vmem:[%s6407_s9 + $0x50] sm:$0xff]  ;;  %v2573_v51 = vld [vmem:[%s6407_s9 + $0x58] sm:$0xff] }
 0x5f9   :  { %4685 = vmatprep.subr.bf16.mxu0 %v5380_v0  ;;  %4725 = vmatprep.subr.bf16.mxu1 %v5380_v0 }
 0x6ae   :  { %v1957_v53 = vpop.f32.mrb[24].mxu0  ;;  %v1912_v54 = vpop.f32.mrb[28].mxu1 }
 0x6af   :  { %v4663_v57 = vpop.f32.mrb[25].mxu0  ;;  %v4657_v58 = vpop.f32.mrb[29].mxu1 }
 0x6b0   :  { %v1960_v59 = vpop.f32.mrb[26].mxu0  ;;  %v1915_v61 = vpop.f32.mrb[30].mxu1  ;;  %v2575_v57 = vld [vmem:[%s6407_s9 + $0x68] sm:$0xff] }
 0x6b1   :  { %v1964_v62 = vpack.c.bf16 %v1960_v59, %v1957_v53  ;;  %v4664_v1 = vpop.f32.mrb[27].mxu0  ;;  %v1919_v2 = vpack.c.bf16 %v1915_v61, %v1912_v54  ;;  %v4658_v52 = vpop.f32.mrb[31].mxu1  ;;  %v5097_v53 = vpack.c.bf16 %v2573_v51, %v2572_v50  ;;  %v2574_v54 = vld [vmem:[%s6407_s9 + $0x60] sm:$0xff]  ;;  %v2576_v59 = vld [vmem:[%s6407_s9 + $0x70] sm:$0xff] }
 0x6b2   :  { %v5100_v58 = vpack.c.bf16 %v2575_v57, %v2574_v54 }
 0x6b3   :  { %4682 = vmatmul.mubr.bf16.vlgmr.msra.gmra.mrb[28].mxu0 %v1964_v62  ;;  %4722 = vmatmul.mubr.bf16.vlgmr.msra.gmra.mrb[32].mxu1 %v1964_v62 }
 0x6b4   :  { %4686 = vmatpush3.bf16.msra.mxu0 %v5326_v60  ;;  %4726 = vmatpush3.bf16.msra.mxu1 %v5327_v43  ;;  %v2577_v60 = vld [vmem:[%s6407_s9 + $0x78] sm:$0xff] }
 0x6b5   :  { %4687 = vmatprep.subr.bf16.mxu0 %v5380_v0  ;;  %4727 = vmatprep.subr.bf16.mxu1 %v5380_v0  ;;  %v5103_v43 = vpack.c.bf16 %v2577_v60, %v2576_v59 }
 0x6b6   :  { %4701 = vmatprep.mubr.msk.bf16.mxu0 %vm5381_vm0, %v5380_v0  ;;  %4741 = vmatprep.mubr.msk.bf16.mxu1 %vm5381_vm0, %v5380_v0 }
 0x6b8   :  { %4688 = vmatpush3.bf16.msra.mxu0 %v5328_v3  ;;  %4728 = vmatpush3.bf16.msra.mxu1 %v5329_v4 }
 0x6b9   :  { %4689 = vmatprep.subr.bf16.mxu0 %v5380_v0  ;;  %4729 = vmatprep.subr.bf16.mxu1 %v5380_v0 }
 0x6bc   :  { %4690 = vmatpush3.bf16.msra.mxu0 %v5330_v5  ;;  %4730 = vmatpush3.bf16.msra.mxu1 %v5331_v6 }
 0x6bd   :  { %4691 = vmatprep.subr.bf16.mxu0 %v5380_v0  ;;  %4731 = vmatprep.subr.bf16.mxu1 %v5380_v0 }
 0x6c0   :  { %4692 = vmatpush3.bf16.msra.mxu0 %v5332_v8  ;;  %4732 = vmatpush3.bf16.msra.mxu1 %v5333_v9 }
 0x6c1   :  { %4693 = vmatprep.subr.bf16.mxu0 %v5380_v0  ;;  %4733 = vmatprep.subr.bf16.mxu1 %v5380_v0 }
 0x6c4   :  { %4694 = vmatpush3.bf16.msra.mxu0 %v5334_v10  ;;  %4734 = vmatpush3.bf16.msra.mxu1 %v5335_v11 }
 0x6c5   :  { %4695 = vmatprep.subr.bf16.mxu0 %v5380_v0  ;;  %4735 = vmatprep.subr.bf16.mxu1 %v5380_v0 }
 0x6c8   :  { %4696 = vmatpush3.bf16.msra.mxu0 %v5336_v13  ;;  %4736 = vmatpush3.bf16.msra.mxu1 %v5337_v14 }
 0x6c9   :  { %4697 = vmatprep.subr.bf16.mxu0 %v5380_v0  ;;  %4737 = vmatprep.subr.bf16.mxu1 %v5380_v0 }
 0x6cc   :  { %4698 = vmatpush3.bf16.msra.mxu0 %v5338_v55  ;;  %4738 = vmatpush3.bf16.msra.mxu1 %v5339_v15  ;;  %v5342_v55 = vld [vmem:[%s6408_s5 + $0x40] sm:$0xff]   ;;  %v5344_v15 = vld [vmem:[%s6408_s5 + $0x48] sm:$0xff]  }
 0x6cd   :  { %4699 = vmatprep.subr.bf16.mxu0 %v5380_v0  ;;  %4739 = vmatprep.subr.bf16.mxu1 %v5380_v0 }
 0x6d0   :  { %4700 = vmatpush3.bf16.msra.mxu0 %v5340_v16  ;;  %4740 = vmatpush3.bf16.msra.mxu1 %v5341_v17  ;;  %v5346_v16 = vld [vmem:[%s6408_s5 + $0x50] sm:$0xff]   ;;  %v5348_v17 = vld [vmem:[%s6408_s5 + $0x58] sm:$0xff]  }
 0x6d1   :  { %5073 = vmatprep.subr.bf16.mxu0 %v5383_v56  ;;  %5081 = vmatprep.subr.bf16.mxu1 %v5383_v56 }
 0x6d3   :  { %4702 = vmatmul.mubr.bf16.vlgmr.msra.gmra.mrb[28].mxu0 %v1919_v2  ;;  %4742 = vmatmul.mubr.bf16.vlgmr.msra.gmra.mrb[32].mxu1 %v1919_v2 }
 0x6d4   :  { %4749 = vmatprep.mubr.msk.f32.mxu0 %vm5381_vm0, %v5380_v0  ;;  %4791 = vmatprep.mubr.msk.f32.mxu1 %vm5381_vm0, %v5380_v0 }
 0x6d5   :  { %5083 = vmatpush3.bf16.msra.mxu1 %v5082_v18 }
 0x6d6   :  { %5084 = vmatprep.subr.bf16.mxu1 %v5383_v56 }
 0x6d9   :  { %5086 = vmatpush3.bf16.msra.mxu1 %v5085_v21 }
 0x6da   :  { %5087 = vmatprep.subr.bf16.mxu1 %v5383_v56 }
 0x6dd   :  { %5089 = vmatpush3.bf16.msra.mxu1 %v5088_v25 }
 0x6de   :  { %5090 = vmatprep.subr.bf16.mxu1 %v5383_v56 }
 0x6e1   :  { %5092 = vmatpush3.bf16.msra.mxu1 %v5091_v28 }
 0x6e2   :  { %5093 = vmatprep.subr.bf16.mxu1 %v5383_v56 }
 0x6e5   :  { %5095 = vmatpush3.bf16.msra.mxu1 %v5094_v31 }
 0x6e6   :  { %5096 = vmatprep.subr.bf16.mxu1 %v5383_v56 }
 0x6e9   :  { %5098 = vmatpush3.bf16.msra.mxu1 %v5097_v53 }
 0x6ea   :  { %5099 = vmatprep.subr.bf16.mxu1 %v5383_v56 }
 0x6ed   :  { %5101 = vmatpush3.bf16.msra.mxu1 %v5100_v58 }
 0x6ee   :  { %5102 = vmatprep.subr.bf16.mxu1 %v5383_v56 }
 0x6f1   :  { %5104 = vmatpush3.bf16.msra.mxu1 %v5103_v43 }
 0x6f2   :  { %4829 = vmatprep.subr.bf16.mxu1 %v5380_v0 }
 0x7a6   :  { %v2169_v35 = vpop.f32.mrb[28].mxu0  ;;  %v2381_v36 = vpop.f32.mrb[32].mxu1 }
 0x7a7   :  { %v4703_v37 = vpop.f32.mrb[29].mxu0  ;;  %v4743_v38 = vpop.f32.mrb[33].mxu1 }
 0x7a8   :  { %v2172_v39 = vpop.f32.mrb[30].mxu0  ;;  %v2384_v42 = vpop.f32.mrb[34].mxu1 }
 0x7a9   :  { %v5078_v44 = vpack.c.bf16 %v2172_v39, %v2169_v35  ;;  %v5074_v45 = vpack.c.bf16 %v2384_v42, %v2381_v36  ;;  %v4704_v46 = vpop.f32.mrb[31].mxu0  ;;  %v4744_v47 = vpop.f32.mrb[35].mxu1  ;;  %v2724_v35 = vld [vmem:[%s6409_s10] sm:$0x1] }
 0x7aa   :  { %v2728_v39 = vld [vmem:[%s6410_s11] sm:$0x1] }
 0x7ab   :  { %5076 = vmatpush3.bf16.msk.msra.mxu0 %vm5075_vm7, %v5074_v45 }
 0x7ac   :  { %5077 = vmatprep.subr.bf16.mxu0 %v5383_v56 }
 0x7ae   :  { %4750 = vmatmul.mubr.msk.f32.vlgmr.msra.gmra.mrb[22].mxu0 %vm2396_vm9, %v2395_v48 }
 0x7af   :  { %5080 = vmatpush3.bf16.msk.msra.mxu0 %vm5075_vm7, %v5078_v44  ;;  %4756 = vmatprep.mubr.msk.f32.mxu0 %vm5381_vm0, %v5380_v0 }
 0x7b0   :  { %5105 = vmatprep.subr.bf16.mxu0 %v5383_v56 }
 0x7b6   :  { %4757 = vmatmul.mubr.msk.f32.vlgmr.msra.gmra.mrb[22].mxu0 %vm2396_vm9, %v2392_v49  ;;  %vm3287_vm9 = vcmask 48128  }
 0x7b7   :  { %5107 = vmatpush3.bf16.msra.mxu0 %v5082_v18  ;;  %4826 = vmatprep.mubr.msk.f32.mxu0 %vm5381_vm0, %v5380_v0 }
 0x7b8   :  { %5108 = vmatprep.subr.bf16.mxu0 %v5383_v56 }
 0x7bb   :  { %5110 = vmatpush3.bf16.msra.mxu0 %v5085_v21 }
 0x7bc   :  { %5111 = vmatprep.subr.bf16.mxu0 %v5383_v56 }
 0x7bf   :  { %5113 = vmatpush3.bf16.msra.mxu0 %v5088_v25 }
 0x7c0   :  { %5114 = vmatprep.subr.bf16.mxu0 %v5383_v56 }
 0x7c3   :  { %5116 = vmatpush3.bf16.msra.mxu0 %v5091_v28  ;;  %v2750_v28 = vsel %vm2749_vm4, 1, %v5382_v24 }
 0x7c4   :  { %5117 = vmatprep.subr.bf16.mxu0 %v5383_v56  ;;  %v2751_v30 = vmul.u32 3, %v2750_v28  ;;  %v2754_v33 = vmul.u32 4, %v2750_v28  ;;  %v5371_v28 = vld [vmem:[%s6408_s5 + $0xb0] sm:$0xff]  }
 0x7c6   :  { %v2752_v32 = vsub.s32 %v5635_v40, %v2751_v30  ;;  %v5373_v30 = vld [vmem:[%s6408_s5 + $0xb8] sm:$0xff]  }
 0x7c7   :  { %5119 = vmatpush3.bf16.msra.mxu0 %v5094_v31 }
 0x7c8   :  { %5120 = vmatprep.subr.bf16.mxu0 %v5383_v56  ;;  %v2755_v34 = vmul.u32 2, %v2752_v32  ;;  %vm2753_vm11 = vcmp.ge.s32.totalorder %v2752_v32, 1  ;;  %vm2761_vm1 = vcmp.le.s32.totalorder %v2752_v32, 1  ;;  %v3456_v32 = vld [vmem:[%s6411_s12] sm:$0xff] }
 0x7ca   :  { %v2756_v36 = vadd.s32 %v2755_v34, %v2754_v33  ;;  %v3457_v33 = vld [vmem:[%s6411_s12 + $0x8] sm:$0xff]  ;;  %v3458_v34 = vld [vmem:[%s6411_s12 + $0x10] sm:$0xff] }
 0x7cb   :  { %5122 = vmatpush3.bf16.msra.mxu0 %v5097_v53 }
 0x7cc   :  { %5123 = vmatprep.subr.bf16.mxu0 %v5383_v56  ;;  %v3926_v45 = vadd.s32 4294967295, %v2756_v36  ;;  %vm2762_vm2 = vcmp.eq.s32.totalorder %v5637_v41, %v2756_v36  ;;  %v3459_v36 = vld [vmem:[%s6411_s12 + $0x18] sm:$0xff] }
 0x7cd   :  { %vm2763_vm5 = vmand %vm2761_vm1, %vm2762_vm2 }
 0x7ce   :  { %vm2758_vm12 = vcmp.eq.s32.totalorder %v5637_v41, %v3926_v45  ;;  %v2764_v59 = vsel %vm2763_vm5, 1.0, %v5380_v0  ;;  %v3463_v45 = vld [vmem:[%s6411_s12 + $0x38] sm:$0xff] }
 0x7cf   :  { %5125 = vmatpush3.bf16.msra.mxu0 %v5100_v58  ;;  %vm2759_vm13 = vmand %vm2753_vm11, %vm2758_vm12  ;;  %v2766_v60 = vpack.c.bf16 %v2764_v59, %v2764_v59 }
 0x7d0   :  { %5126 = vmatprep.subr.bf16.mxu0 %v5383_v56  ;;  %v2760_v53 = vsel %vm2759_vm13, 1.0, %v5380_v0 }
 0x7d1   :  { %v2765_v58 = vpack.c.bf16 %v2760_v53, %v2760_v53 }
 0x7d3   :  { %5128 = vmatpush3.bf16.msra.mxu0 %v5103_v43  ;;  %v5343_v43 = vld [vmem:[%s6408_s5 + $0xc0] sm:$0xff]  }
 0x7d4   :  { %4841 = vmatprep.subr.bf16.mxu0 %v5380_v0 }
 0x889   :  { %v6140_v61 = vpop.f32.mrb[22].mxu0 }
 0x88a   :  { %v2549_v62 = vrot.slane %v6140_v61, 4  ;;  %v2555_v1 = vmul.f32 %v6140_v61, %v6140_v61  ;;  %v4758_v2 = vpop.f32.mrb[23].mxu0 }
 0x88b   :  { %v5351_v2 = vld [vmem:[%s6408_s5 + $0xe0] sm:$0xff]  }
 0x88c   :  { %v2550_v52 = vadd.f32 %v2549_v62, %v6140_v61  ;;  %v2556_v3 = vrot.slane %v2555_v1, 4  ;;  %v5347_v62 = vld [vmem:[%s6408_s5 + $0xd0] sm:$0xff]  }
 0x88e   :  { %v2551_v4 = vrot.slane %v2550_v52, 2  ;;  %v2557_v5 = vadd.f32 %v2556_v3, %v2555_v1  ;;  %v5349_v1 = vld [vmem:[%s6408_s5 + $0xd8] sm:$0xff]   ;;  %v5355_v3 = vld [vmem:[%s6408_s5 + $0xf0] sm:$0xff]  }
 0x890   :  { %v2552_v6 = vadd.f32 %v2551_v4, %v2550_v52  ;;  %v2558_v8 = vrot.slane %v2557_v5, 2  ;;  %v5353_v52 = vld [vmem:[%s6408_s5 + $0xe8] sm:$0xff]   ;;  %v5356_v4 = vld [vmem:[%s6408_s5 + $0x78] sm:$0xff]  }
 0x892   :  { %v2553_v9 = vrot.slane %v2552_v6, 1  ;;  %v2559_v10 = vadd.f32 %v2558_v8, %v2557_v5  ;;  %v5357_v5 = vld [vmem:[%s6408_s5 + $0xf8] sm:$0xff]  }
 0x894   :  { %v2554_v11 = vadd.f32 %v2553_v9, %v2552_v6  ;;  %v2560_v13 = vrot.slane %v2559_v10, 1 }
 0x896   :  { %4792 = vmatmul.mubr.f32.vlgmr.msra.gmra.mrb[36].mxu1 %v2554_v11  ;;  %v2561_v14 = vadd.f32 %v2560_v13, %v2559_v10  ;;  %v5358_v13 = vld [vmem:[%s6408_s5] sm:$0xff]  }
 0x897   :  { %4831 = vmatprep.mubr.msk.bf16.mxu1 %vm5381_vm0, %v5380_v0 }
 0x898   :  { %4827 = vmatmul.mubr.f32.vlgmr.msra.gmra.mrb[32].mxu0 %v2561_v14  ;;  %v5359_v14 = vld [vmem:[%s6408_s5 + $0x80] sm:$0xff]  }
 0x899   :  { %4857 = vmatprep.mubr.msk.bf16.mxu0 %vm5381_vm0, %v5380_v0  ;;  %4842 = vmatpush3.bf16.msra.mxu0 %v5342_v55 }
 0x89a   :  { %4843 = vmatprep.subr.bf16.mxu0 %v5380_v0 }
 0x89d   :  { %4844 = vmatpush3.bf16.msra.mxu0 %v5344_v15 }
 0x89e   :  { %4845 = vmatprep.subr.bf16.mxu0 %v5380_v0 }
 0x8a1   :  { %4846 = vmatpush3.bf16.msra.mxu0 %v5346_v16 }
 0x8a2   :  { %4847 = vmatprep.subr.bf16.mxu0 %v5380_v0 }
 0x8a5   :  { %4848 = vmatpush3.bf16.msra.mxu0 %v5348_v17 }
 0x8a6   :  { %4849 = vmatprep.subr.bf16.mxu0 %v5380_v0 }
 0x8a9   :  { %4850 = vmatpush3.bf16.msra.mxu0 %v5350_v63  ;;  %v5360_v63 = vld [vmem:[%s6408_s5 + $0x8] sm:$0xff]  }
 0x8aa   :  { %4851 = vmatprep.subr.bf16.mxu0 %v5380_v0 }
 0x8ad   :  { %4852 = vmatpush3.bf16.msra.mxu0 %v5352_v12  ;;  %v5361_v12 = vld [vmem:[%s6408_s5 + $0x88] sm:$0xff]  }
 0x8ae   :  { %4853 = vmatprep.subr.bf16.mxu0 %v5380_v0 }
 0x8b1   :  { %4854 = vmatpush3.bf16.msra.mxu0 %v5354_v20  ;;  %v5362_v20 = vld [vmem:[%s6408_s5 + $0x10] sm:$0xff]  }
 0x8b2   :  { %4855 = vmatprep.subr.bf16.mxu0 %v5380_v0 }
 0x8b5   :  { %4856 = vmatpush3.bf16.msra.mxu0 %v5356_v4  ;;  %v3470_v4 = vld [vmem:[%s6411_s12 + $0x70] sm:$0xff] }
 0x8b6   :  { %4861 = vmatprep.subr.bf16.mxu0 %v5380_v0 }
 0x969   :  { %v2644_v18 = vpop.f32.mrb[36].mxu1 }
 0x96a   :  { %v2649_v19 = vmul.f32 0.03125, %v2644_v18  ;;  %v4793_v21 = vpop.f32.mrb[37].mxu1  ;;  %v5363_v18 = vld [vmem:[%s6408_s5 + $0x90] sm:$0xff]  }
 0x96b   :  { %v2716_v22 = vpop.f32.mrb[32].mxu0  ;;  %v5365_v21 = vld [vmem:[%s6408_s5 + $0x98] sm:$0xff]  }
 0x96c   :  { %v2721_v23 = vmul.f32 %v2649_v19, %v2649_v19  ;;  %v2720_v25 = vmul.f32 0.03125, %v2716_v22  ;;  %v4828_v26 = vpop.f32.mrb[33].mxu0  ;;  %v5366_v22 = vld [vmem:[%s6408_s5 + $0x20] sm:$0xff]  }
 0x96d   :  { %v5369_v26 = vld [vmem:[%s6408_s5 + $0xa8] sm:$0xff]  }
 0x96e   :  { %v2722_v27 = vsub.f32 %v2720_v25, %v2721_v23  ;;  %v5367_v23 = vld [vmem:[%s6408_s5 + $0xa0] sm:$0xff]   ;;  %v5368_v25 = vld [vmem:[%s6408_s5 + $0x28] sm:$0xff]  }
 0x970   :  { %v2723_v29 = vmax.f32 %v2722_v27, 0.0  ;;  %v5370_v27 = vld [vmem:[%s6408_s5 + $0x30] sm:$0xff]  }
 0x972   :  { %v2725_v31 = vadd.f32 1e-05, %v2723_v29  ;;  %v5372_v29 = vld [vmem:[%s6408_s5 + $0x38] sm:$0xff]  }
 0x974   :  { %5376 = vrsqrt.f32 %v2725_v31 }
 0x97e   :  { %v5377_v37 = vpop.eup %5376 }
 0x97f   :  { %v2727_v38 = vmul.f32 %v5377_v37, %v2724_v35  ;;  %v5130_v35 = vpack.c.bf16 %v3457_v33, %v3456_v32  ;;  %v5133_v37 = vpack.c.bf16 %v3459_v36, %v3458_v34  ;;  %v3618_v33 = vld [vmem:[%s6412_s13] sm:$0x1] }
 0x980   :  { %v3622_v36 = vld [vmem:[%s6413_s14] sm:$0x1] }
 0x981   :  { %v2729_v42 = vmul.f32 %v2727_v38, %v2649_v19  ;;  %v2735_v44 = vrot.slane %v2727_v38, %v5905_v7  ;;  %v5364_v19 = vld [vmem:[%s6408_s5 + $0x18] sm:$0xff]   ;;  %v3460_v38 = vld [vmem:[%s6411_s12 + $0x20] sm:$0xff] }
 0x983   :  { %v2730_v46 = vsub.f32 %v2728_v39, %v2729_v42  ;;  %v2737_v47 = vmul.f32 %v2735_v44, %v6140_v61  ;;  %v5345_v61 = vld [vmem:[%s6408_s5 + $0xc8] sm:$0xff]   ;;  %v3462_v44 = vld [vmem:[%s6411_s12 + $0x30] sm:$0xff] }
 0x984   :  { %v3461_v39 = vld [vmem:[%s6411_s12 + $0x28] sm:$0xff] }
 0x985   :  { %v2742_v48 = vrot.slane %v2730_v46, %v5905_v7  ;;  %v5136_v42 = vpack.c.bf16 %v3461_v39, %v3460_v38  ;;  %v5139_v46 = vpack.c.bf16 %v3463_v45, %v3462_v44 }
 0x987   :  { %v2744_v49 = vadd.f32 %v2742_v48, %v2737_v47  ;;  %v3464_v47 = vld [vmem:[%s6411_s12 + $0x40] sm:$0xff]  ;;  %v3465_v48 = vld [vmem:[%s6411_s12 + $0x48] sm:$0xff] }
 0x989   :  { %vm2745_vm14 = vcmp.ge.f32.partialorder %v2744_v49, 0.0  ;;  %v2746_v50 = vmul.f32 0.2, %v2744_v49 }
 0x98b   :  { %v2747_v51 = vsel %vm2745_vm14, %v2744_v49, %v2746_v50  ;;  %v5142_v49 = vpack.c.bf16 %v3465_v48, %v3464_v47  ;;  %v3280_v50 = vsel %vm3279_vm6, 1, %v5382_v24 }
 0x98c   :  { %v2748_v54 = vpack.c.bf16 %v2747_v51, %v2747_v51  ;;  %v3281_v51 = vadd.s32 %v3280_v50, %v5635_v40 }
 0x98e   :  { %v2773_v57 = vsel %vm2771_vm15, %v2748_v54, 0  ;;  %v3284_v53 = vadd.s32 1, %v3281_v51  ;;  %vm3282_vm10 = vcmp.eq.s32.totalorder %v5637_v41, %v3281_v51 }
 0x98f   :  { %4830 = vmatpush3.bf16.msra.mxu1 %v2773_v57 }
 0x990   :  { %4835 = vmatprep.subr.bf16.mxu1 %v5380_v0  ;;  %vm3285_vm7 = vcmp.eq.s32.totalorder %v5637_v41, %v3284_v53  ;;  %v3466_v41 = vld [vmem:[%s6411_s12 + $0x50] sm:$0xff] }
 0x991   :  { %v3286_v54 = vsel %vm3285_vm7, 1.0, %v5380_v0 }
 0x992   :  { %4832 = vmatmul.mubr.msk.bf16.vlgmr.msra.gmra.mrb[40].mxu1 %vm2767_vm3, %v2765_v58 }
 0x993   :  { %4836 = vmatpush3.bf16.msra.mxu1 %v2773_v57  ;;  %4837 = vmatprep.mubr.msk.bf16.mxu1 %vm5381_vm0, %v5380_v0 }
 0x994   :  { %4881 = vmatprep.subr.bf16.mxu1 %v5380_v0 }
 0x99a   :  { %4838 = vmatmul.mubr.msk.bf16.vlgmr.msra.gmra.mrb[44].mxu1 %vm2767_vm3, %v2766_v60 }
 0x99b   :  { %4882 = vmatpush3.bf16.msra.mxu1 %v5343_v43  ;;  %4897 = vmatprep.mubr.msk.bf16.mxu1 %vm5381_vm0, %v5380_v0 }
 0x99c   :  { %4883 = vmatprep.subr.bf16.mxu1 %v5380_v0 }
 0x99f   :  { %4884 = vmatpush3.bf16.msra.mxu1 %v5345_v61 }
 0x9a0   :  { %4885 = vmatprep.subr.bf16.mxu1 %v5380_v0 }
 0x9a3   :  { %4886 = vmatpush3.bf16.msra.mxu1 %v5347_v62  ;;  %v3283_v62 = vsel %vm3282_vm10, 1.0, %v5380_v0 }
 0x9a4   :  { %4887 = vmatprep.subr.bf16.mxu1 %v5380_v0 }
 0x9a7   :  { %4888 = vmatpush3.bf16.msra.mxu1 %v5349_v1 }
 0x9a8   :  { %4889 = vmatprep.subr.bf16.mxu1 %v5380_v0 }
 0x9ab   :  { %4890 = vmatpush3.bf16.msra.mxu1 %v5351_v2  ;;  %v3468_v2 = vld [vmem:[%s6411_s12 + $0x60] sm:$0xff] }
 0x9ac   :  { %4891 = vmatprep.subr.bf16.mxu1 %v5380_v0 }
 0x9af   :  { %4892 = vmatpush3.bf16.msra.mxu1 %v5353_v52  ;;  %v3469_v52 = vld [vmem:[%s6411_s12 + $0x68] sm:$0xff] }
 0x9b0   :  { %4893 = vmatprep.subr.bf16.mxu1 %v5380_v0 }
 0x9b3   :  { %4894 = vmatpush3.bf16.msra.mxu1 %v5355_v3  ;;  %v5148_v3 = vpack.c.bf16 %v3469_v52, %v3468_v2 }
 0x9b4   :  { %4895 = vmatprep.subr.bf16.mxu1 %v5380_v0 }
 0x9b7   :  { %4896 = vmatpush3.bf16.msra.mxu1 %v5357_v5  ;;  %v3471_v5 = vld [vmem:[%s6411_s12 + $0x78] sm:$0xff] }
 0x9b8   :  { %4901 = vmatprep.subr.bf16.mxu1 %v5380_v0 }
 0xa65   :  { %v2809_v6 = vpop.f32.mrb[40].mxu1 }
 0xa66   :  { %v4833_v8 = vpop.f32.mrb[41].mxu1  ;;  %v2815_v31 = vpack.c.bf16 %v2809_v6, %v2809_v6  ;;  %v5151_v6 = vpack.c.bf16 %v3471_v5, %v3470_v4 }
 0xa67   :  { %v2812_v9 = vpop.f32.mrb[42].mxu1 }
 0xa68   :  { %v4834_v10 = vpop.f32.mrb[43].mxu1 }
 0xa6d   :  { %v2853_v11 = vpop.f32.mrb[44].mxu1 }
 0xa6e   :  { %v2859_v55 = vpack.c.bf16 %v2853_v11, %v2853_v11  ;;  %v4839_v15 = vpop.f32.mrb[45].mxu1 }
 0xa6f   :  { %v2856_v16 = vpop.f32.mrb[46].mxu1 }
 0xa70   :  { %4858 = vmatmul.mubr.bf16.vlgmr.msra.gmra.mrb[36].mxu0 %v2859_v55  ;;  %4898 = vmatmul.mubr.bf16.vlgmr.msra.gmra.mrb[48].mxu1 %v2859_v55  ;;  %v4840_v17 = vpop.f32.mrb[47].mxu1 }
 0xa71   :  { %4862 = vmatpush3.bf16.msra.mxu0 %v5358_v13  ;;  %4902 = vmatpush3.bf16.msra.mxu1 %v5359_v14 }
 0xa72   :  { %4863 = vmatprep.subr.bf16.mxu0 %v5380_v0  ;;  %4903 = vmatprep.subr.bf16.mxu1 %v5380_v0 }
 0xa73   :  { %4877 = vmatprep.mubr.msk.bf16.mxu0 %vm5381_vm0, %v5380_v0  ;;  %4917 = vmatprep.mubr.msk.bf16.mxu1 %vm5381_vm0, %v5380_v0 }
 0xa75   :  { %4864 = vmatpush3.bf16.msra.mxu0 %v5360_v63  ;;  %4904 = vmatpush3.bf16.msra.mxu1 %v5361_v12 }
 0xa76   :  { %4865 = vmatprep.subr.bf16.mxu0 %v5380_v0  ;;  %4905 = vmatprep.subr.bf16.mxu1 %v5380_v0 }
 0xa79   :  { %4866 = vmatpush3.bf16.msra.mxu0 %v5362_v20  ;;  %4906 = vmatpush3.bf16.msra.mxu1 %v5363_v18 }
 0xa7a   :  { %4867 = vmatprep.subr.bf16.mxu0 %v5380_v0  ;;  %4907 = vmatprep.subr.bf16.mxu1 %v5380_v0 }
 0xa7d   :  { %4868 = vmatpush3.bf16.msra.mxu0 %v5364_v19  ;;  %4908 = vmatpush3.bf16.msra.mxu1 %v5365_v21 }
 0xa7e   :  { %4869 = vmatprep.subr.bf16.mxu0 %v5380_v0  ;;  %4909 = vmatprep.subr.bf16.mxu1 %v5380_v0 }
 0xa81   :  { %4870 = vmatpush3.bf16.msra.mxu0 %v5366_v22  ;;  %4910 = vmatpush3.bf16.msra.mxu1 %v5367_v23 }
 0xa82   :  { %4871 = vmatprep.subr.bf16.mxu0 %v5380_v0  ;;  %4911 = vmatprep.subr.bf16.mxu1 %v5380_v0 }
 0xa85   :  { %4872 = vmatpush3.bf16.msra.mxu0 %v5368_v25  ;;  %4912 = vmatpush3.bf16.msra.mxu1 %v5369_v26 }
 0xa86   :  { %4873 = vmatprep.subr.bf16.mxu0 %v5380_v0  ;;  %4913 = vmatprep.subr.bf16.mxu1 %v5380_v0 }
 0xa89   :  { %4874 = vmatpush3.bf16.msra.mxu0 %v5370_v27  ;;  %4914 = vmatpush3.bf16.msra.mxu1 %v5371_v28 }
 0xa8a   :  { %4875 = vmatprep.subr.bf16.mxu0 %v5380_v0  ;;  %4915 = vmatprep.subr.bf16.mxu1 %v5380_v0 }
 0xa8d   :  { %4876 = vmatpush3.bf16.msra.mxu0 %v5372_v29  ;;  %4916 = vmatpush3.bf16.msra.mxu1 %v5373_v30 }
 0xa8e   :  { %4921 = vmatprep.subr.mxu0 %v5380_v0  ;;  %5129 = vmatprep.subr.bf16.mxu1 %v5383_v56 }
 0xa90   :  { %4878 = vmatmul.mubr.bf16.vlgmr.msra.gmra.mrb[36].mxu0 %v2815_v31  ;;  %4918 = vmatmul.mubr.bf16.vlgmr.msra.gmra.mrb[48].mxu1 %v2815_v31 }
 0xa91   :  { %4923 = vmatprep.mubr.msk.f32.mxu0 %vm5381_vm0, %v5380_v0  ;;  %4963 = vmatprep.mubr.msk.f32.mxu1 %vm5381_vm0, %v5380_v0 }
 0xa92   :  { %5131 = vmatpush3.bf16.msra.mxu1 %v5130_v35 }
 0xa93   :  { %5132 = vmatprep.subr.bf16.mxu1 %v5383_v56 }
 0xa96   :  { %5134 = vmatpush3.bf16.msra.mxu1 %v5133_v37 }
 0xa97   :  { %5135 = vmatprep.subr.bf16.mxu1 %v5383_v56 }
 0xa9a   :  { %5137 = vmatpush3.bf16.msra.mxu1 %v5136_v42 }
 0xa9b   :  { %5138 = vmatprep.subr.bf16.mxu1 %v5383_v56 }
 0xa9e   :  { %5140 = vmatpush3.bf16.msra.mxu1 %v5139_v46 }
 0xa9f   :  { %5141 = vmatprep.subr.bf16.mxu1 %v5383_v56 }
 0xaa2   :  { %5143 = vmatpush3.bf16.msra.mxu1 %v5142_v49 }
 0xaa3   :  { %5144 = vmatprep.subr.bf16.mxu1 %v5383_v56 }
 0xb63   :  { %v3063_v57 = vpop.f32.mrb[36].mxu0  ;;  %v3273_v58 = vpop.f32.mrb[48].mxu1 }
 0xb64   :  { %v4879_v59 = vpop.f32.mrb[37].mxu0  ;;  %v4919_v60 = vpop.f32.mrb[49].mxu1  ;;  %4922 = vmatpush3.msk.msra.mxu0 %vm3291_vm8, %v3273_v58 }
 0xb65   :  { %v3066_v43 = vpop.f32.mrb[38].mxu0  ;;  %v3276_v61 = vpop.f32.mrb[50].mxu1  ;;  %4924 = vmatmul.mubr.msk.f32.vlgmr.msra.gmra.mrb[34].mxu0 %vm3287_vm9, %v3286_v54  ;;  %4926 = vmatprep.subr.mxu0 %v5380_v0 }
 0xb66   :  { %v4880_v24 = vpop.f32.mrb[39].mxu0  ;;  %v4920_v40 = vpop.f32.mrb[51].mxu1  ;;  %4927 = vmatpush3.msk.msra.mxu0 %vm3291_vm8, %v3063_v57  ;;  %4928 = vmatprep.mubr.msk.f32.mxu0 %vm5381_vm0, %v5380_v0 }
 0xb67   :  { %5153 = vmatprep.subr.bf16.mxu0 %v5383_v56 }
 0xb6d   :  { %4929 = vmatmul.mubr.msk.f32.vlgmr.msra.gmra.mrb[34].mxu0 %vm3287_vm9, %v3283_v62 }
 0xb6e   :  { %5155 = vmatpush3.bf16.msra.mxu0 %v5130_v35  ;;  %4998 = vmatprep.mubr.msk.f32.mxu0 %vm5381_vm0, %v5380_v0  ;;  %v3467_v0 = vld [vmem:[%s6411_s12 + $0x58] sm:$0xff] }
 0xb6f   :  { %5156 = vmatprep.subr.bf16.mxu0 %v5383_v56  ;;  %v5145_v1 = vpack.c.bf16 %v3467_v0, %v3466_v41 }
 0xb71   :  { %5146 = vmatpush3.bf16.msra.mxu1 %v5145_v1 }
 0xb72   :  { %5158 = vmatpush3.bf16.msra.mxu0 %v5133_v37  ;;  %5147 = vmatprep.subr.bf16.mxu1 %v5383_v56 }
 0xb73   :  { %5159 = vmatprep.subr.bf16.mxu0 %v5383_v56 }
 0xb75   :  { %5149 = vmatpush3.bf16.msra.mxu1 %v5148_v3 }
 0xb76   :  { %5161 = vmatpush3.bf16.msra.mxu0 %v5136_v42  ;;  %5150 = vmatprep.subr.bf16.mxu1 %v5383_v56 }
 0xb77   :  { %5162 = vmatprep.subr.bf16.mxu0 %v5383_v56 }
 0xb79   :  { %5152 = vmatpush3.bf16.msra.mxu1 %v5151_v6 }
 0xb7a   :  { %5164 = vmatpush3.bf16.msra.mxu0 %v5139_v46 }
 0xb7b   :  { %5165 = vmatprep.subr.bf16.mxu0 %v5383_v56 }
 0xb7e   :  { %5167 = vmatpush3.bf16.msra.mxu0 %v5142_v49 }
 0xb7f   :  { %5168 = vmatprep.subr.bf16.mxu0 %v5383_v56 }
 0xb82   :  { %5170 = vmatpush3.bf16.msra.mxu0 %v5145_v1 }
 0xb83   :  { %5171 = vmatprep.subr.bf16.mxu0 %v5383_v56 }
 0xb86   :  { %5173 = vmatpush3.bf16.msra.mxu0 %v5148_v3 }
 0xb87   :  { %5174 = vmatprep.subr.bf16.mxu0 %v5383_v56 }
 0xb8a   :  { %5176 = vmatpush3.bf16.msra.mxu0 %v5151_v6 }
 0xc40   :  { %v3437_v8 = vpop.f32.mrb[34].mxu0 }
 0xc41   :  { %v3441_v9 = vsel %vm2771_vm15, %v3437_v8, 0.0  ;;  %v3448_v10 = vmul.f32 %v3437_v8, %v3437_v8  ;;  %v4930_v11 = vpop.f32.mrb[35].mxu0 }
 0xc42   :  { %v3442_v13 = vrot.slane %v3441_v9, 4 }
 0xc43   :  { %v3449_v14 = vsel %vm2771_vm15, %v3448_v10, 0.0 }
 0xc44   :  { %v3443_v55 = vadd.f32 %v3442_v13, %v3441_v9  ;;  %v3450_v15 = vrot.slane %v3449_v14, 4 }
 0xc46   :  { %v3444_v16 = vrot.slane %v3443_v55, 2  ;;  %v3451_v17 = vadd.f32 %v3450_v15, %v3449_v14 }
 0xc48   :  { %v3445_v63 = vadd.f32 %v3444_v16, %v3443_v55  ;;  %v3452_v12 = vrot.slane %v3451_v17, 2 }
 0xc4a   :  { %v3446_v20 = vrot.slane %v3445_v63, 1  ;;  %v3453_v18 = vadd.f32 %v3452_v12, %v3451_v17 }
 0xc4c   :  { %v3447_v56 = vadd.f32 %v3446_v20, %v3445_v63  ;;  %v3454_v19 = vrot.slane %v3453_v18, 1 }
 0xc4e   :  { %4964 = vmatmul.mubr.f32.vlgmr.msra.gmra.mrb[38].mxu1 %v3447_v56  ;;  %v3455_v21 = vadd.f32 %v3454_v19, %v3453_v18 }
 0xc50   :  { %4999 = vmatmul.mubr.f32.vlgmr.msra.gmra.mrb[40].mxu0 %v3455_v21 }
 0xd21   :  { %v3538_v22 = vpop.f32.mrb[38].mxu1 }
 0xd22   :  { %v3543_v23 = vmul.f32 0.125, %v3538_v22  ;;  %v4965_v25 = vpop.f32.mrb[39].mxu1 }
 0xd23   :  { %v3610_v26 = vpop.f32.mrb[40].mxu0 }
 0xd24   :  { %v3615_v27 = vmul.f32 %v3543_v23, %v3543_v23  ;;  %v3614_v28 = vmul.f32 0.125, %v3610_v26  ;;  %v5000_v29 = vpop.f32.mrb[41].mxu0 }
 0xd26   :  { %v3616_v30 = vsub.f32 %v3614_v28, %v3615_v27 }
 0xd28   :  { %v3617_v31 = vmax.f32 %v3616_v30, 0.0 }
 0xd2a   :  { %v3619_v32 = vadd.f32 1e-05, %v3617_v31 }
 0xd2c   :  { %5378 = vrsqrt.f32 %v3619_v32 }
 0xd36   :  { %v5379_v34 = vpop.eup %5378 }
 0xd37   :  { %v3621_v35 = vmul.f32 %v5379_v34, %v3618_v33 }
 0xd39   :  { %v3623_v37 = vmul.f32 %v3621_v35, %v3543_v23  ;;  %v3629_v38 = vrot.slane %v3621_v35, %v5905_v7 }
 0xd3b   :  { %v3624_v39 = vsub.f32 %v3622_v36, %v3623_v37  ;;  %v3631_v42 = vmul.f32 %v3629_v38, %v3437_v8 }
 0xd3d   :  { %v3636_v44 = vrot.slane %v3624_v39, %v5905_v7 }
 0xd3f   :  { %v3638_v45 = vadd.f32 %v3636_v44, %v3631_v42 }
 0xd41   :  { %vm3639_vm0 = vcmp.ge.f32.partialorder %v3638_v45, 0.0  ;;  %v3640_v46 = vmul.f32 0.2, %v3638_v45 }
 0xd43   :  { %v3641_v47 = vsel %vm3639_vm0, %v3638_v45, %v3640_v46 }
 0xd44   :  { %3642 = vst [vmem:[%s6414_s15] sm:$0xf] %v3641_v47 }

</bundles_post_ra>
